<compile_context>
chip_gen: v5e
topology: v5e:2x2
jax: 0.10.0
libtpu: 0.0.40
codegen_flags: <defaults>
</compile_context>

<pallas_src>
import jax
import jax.numpy as jnp
from jax.experimental import pallas as pl
from jax.experimental.pallas import tpu as pltpu


def _round_up(x, m):
    return (x + m - 1) // m * m


def _round_down(x, m):
    return max(m, x // m * m)


# --------------------------------------------------------------------------- #
# Kernel
# --------------------------------------------------------------------------- #
def _ae_kernel(x_ref,
               w1_ref, b1_ref, w2_ref, b2_ref, w3_ref, b3_ref,
               w4_ref, b4_ref, w5_ref, b5_ref, w6_ref, b6_ref,
               enc_ref, dec_ref):
    cdt = w1_ref.dtype                      # MXU input dtype (bf16)
    relu = lambda t: jnp.maximum(t, 0.0)

    x = x_ref[...]                          # already compute dtype (no per-step cast)

    # ---- encoder:  Linear(in,256) ReLU Linear(256,128) ReLU Linear(128,enc) ----
    h = jnp.dot(x, w1_ref[...], preferred_element_type=jnp.float32) + b1_ref[...]
    h = relu(h).astype(cdt)
    h = jnp.dot(h, w2_ref[...], preferred_element_type=jnp.float32) + b2_ref[...]
    h = relu(h).astype(cdt)
    enc = jnp.dot(h, w3_ref[...], preferred_element_type=jnp.float32) + b3_ref[...]
    enc_ref[...] = enc.astype(enc_ref.dtype)            # small -> keep f32

    # ---- decoder:  Linear(enc,128) ReLU Linear(128,256) ReLU Linear(256,in) ----
    d = jnp.dot(enc.astype(cdt), w4_ref[...],
                preferred_element_type=jnp.float32) + b4_ref[...]
    d = relu(d).astype(cdt)
    d = jnp.dot(d, w5_ref[...], preferred_element_type=jnp.float32) + b5_ref[...]
    d = relu(d).astype(cdt)
    dec = jnp.dot(d, w6_ref[...], preferred_element_type=jnp.float32) + b6_ref[...]
    dec_ref[...] = dec.astype(dec_ref.dtype)            # bf16 writeback (large stream)


# --------------------------------------------------------------------------- #
# Parameter pre-processing (hoisted out of the per-call forward)
# --------------------------------------------------------------------------- #
def prepare_params(params, *, compute_dtype=jnp.bfloat16):
    """Pad feature dims to multiples of 128 and cast weights to compute_dtype.

    Do this ONCE and reuse the result across forward calls.
    """
    input_dim = params["w1"].shape[0]
    encoding_dim = params["w3"].shape[1]
    in_pad = _round_up(input_dim, 128)
    enc_pad = _round_up(encoding_dim, 128)

    def pad2(a, rows, cols):
        return jnp.pad(a, ((0, rows - a.shape[0]), (0, cols - a.shape[1])))

    w = dict(params)
    w["w1"] = pad2(params["w1"], in_pad, 256)    # zero rows: padded x cols are no-ops
    w["w3"] = pad2(params["w3"], 128, enc_pad)   # zero cols: enc padding is exact 0
    w["b3"] = pad2(params["b3"], 1, enc_pad)
    w["w4"] = pad2(params["w4"], enc_pad, 128)   # zero rows: padded enc cols no-ops
    w["w6"] = pad2(params["w6"], 256, in_pad)    # zero cols: dec padding is exact 0
    w["b6"] = pad2(params["b6"], 1, in_pad)

    names = ("w1", "b1", "w2", "b2", "w3", "b3",
             "w4", "b4", "w5", "b5", "w6", "b6")
    args = tuple(
        w[n].astype(compute_dtype) if n.startswith("w") else w[n].astype(jnp.float32)
        for n in names)
    meta = dict(input_dim=input_dim, encoding_dim=encoding_dim,
                in_pad=in_pad, enc_pad=enc_pad, compute_dtype=compute_dtype)
    return args, meta


# --------------------------------------------------------------------------- #
# VMEM-budget helpers (generation-aware)
# --------------------------------------------------------------------------- #
def _vmem_budget_bytes():
    default_cap = 64 * 1024 * 1024
    try:
        cap = int(getattr(pltpu.get_tpu_info(), "vmem_capacity_bytes", default_cap))
    except Exception:
        cap = default_cap
    cap = max(cap, 32 * 1024 * 1024)
    # ~85% of physical VMEM: ~54 MiB on v7x (64 MiB), ~108 MiB on v5e/v6e (128 MiB).
    return min(int(cap * 0.85), 112 * 1024 * 1024)


def _pick_batch_tile(B, in_pad, enc_pad, weight_bytes, vmem_budget, batch_tile_cap):
    """Largest MXU-friendly batch tile that fits the VMEM budget."""
    # Double-buffered streamed blocks per row: x (bf16) + dec (bf16) + enc (f32).
    io_per_row = 2 * (in_pad * 2 + in_pad * 2 + enc_pad * 4)
    # Single-buffered intermediates per row (f32 + bf16 copies), conservative.
    inter_per_row = (256 + 128 + enc_pad + 128 + 256 + in_pad) * 6
    per_row = io_per_row + inter_per_row
    # Budget weights at 2x (safe even if single-buffering is unavailable).
    avail = max(vmem_budget - 2 * weight_bytes, per_row * 16)
    bt_max = max(16, avail // per_row)

    bt = min(batch_tile_cap, int(bt_max), _round_up(B, 16))
    if bt >= 256:
        bt = _round_down(bt, 256)        # v6e/v7x: 2x256x256 MXU -> M multiple of 256
    elif bt >= 128:
        bt = _round_down(bt, 128)        # v5e: 4x128x128 MXU
    else:
        bt = _round_up(bt, 16)           # bf16 sublane packing (16 rows / vreg)
    return bt


# --------------------------------------------------------------------------- #
# Forward wrapper
# --------------------------------------------------------------------------- #
def gwas_autoencoder_forward(x, prepared, *, batch_tile=512):
    """Forward pass of GWASAutoencoder as one fused Pallas kernel.

    prepared: output of prepare_params(params).
    Returns (encoded, decoded) in float32, matching the PyTorch module.
    """
    args, meta = prepared
    B, input_dim = x.shape
    assert input_dim == meta["input_dim"]
    in_pad, enc_pad = meta["in_pad"], meta["enc_pad"]
    encoding_dim = meta["encoding_dim"]
    cdt = meta["compute_dtype"]

    weight_bytes = sum(int(a.size) * a.dtype.itemsize for a in args)
    vmem_budget = _vmem_budget_bytes()

    bt = _pick_batch_tile(B, in_pad, enc_pad, weight_bytes, vmem_budget, batch_tile)
    B_pad = _round_up(B, bt)
    # Guarantee >= 2 grid steps when the batch allows, so v7x's "parallel" axis
    # actually feeds both TensorCores (bt stays a multiple of 128 here).
    if B_pad // bt < 2 and B_pad >= 256:
        bt = B_pad // 2
    grid = (B_pad // bt,)

    # Pre-cast x to the compute dtype (halves the dominant HBM input stream).
    x_p = jnp.pad(x.astype(cdt), ((0, B_pad - B), (0, in_pad - input_dim)))

    out_shape = (
        jax.ShapeDtypeStruct((B_pad, enc_pad), jnp.float32),
        jax.ShapeDtypeStruct((B_pad, in_pad), cdt),     # bf16 decoded writeback
    )
    out_specs = [
        pl.BlockSpec((bt, enc_pad), lambda i: (i, 0)),
        pl.BlockSpec((bt, in_pad), lambda i: (i, 0)),
    ]

    def build(single_buffer_weights):
        in_specs = [pl.BlockSpec((bt, in_pad), lambda i: (i, 0))]
        for a in args:
            if single_buffer_weights:
                # Constant index_map -> never re-fetched; single buffer halves
                # the resident-weight VMEM footprint.
                in_specs.append(pl.BlockSpec(a.shape, lambda i: (0, 0),
                                             pipeline_mode=pl.Buffered(1)))
            else:
                in_specs.append(pl.BlockSpec(a.shape, lambda i: (0, 0)))
        return pl.pallas_call(
            _ae_kernel,
            out_shape=out_shape,
            grid_spec=pltpu.PrefetchScalarGridSpec(
                num_scalar_prefetch=0,
                grid=grid,
                in_specs=in_specs,
                out_specs=out_specs,
            ),
            compiler_params=pltpu.CompilerParams(
                dimension_semantics=("parallel",),
                vmem_limit_bytes=vmem_budget,
            ),
        )

    try:
        enc_p, dec_p = build(True)(x_p, *args)
    except Exception:
        # Fallback for JAX versions without single-buffered pipeline_mode support.
        enc_p, dec_p = build(False)(x_p, *args)

    encoded = enc_p[:B, :encoding_dim]
    decoded = dec_p[:B, :input_dim].astype(jnp.float32)
    return encoded, decoded


# --------------------------------------------------------------------------- #
# Parameter init + references
# --------------------------------------------------------------------------- #
def init_params(key, input_dim, encoding_dim):
    """Deterministic synthetic init; weights stored as (in, out), like W.T."""
    sizes = [(input_dim, 256), (256, 128), (128, encoding_dim),
             (encoding_dim, 128), (128, 256), (256, input_dim)]
    params = {}
    keys = jax.random.split(key, 2 * len(sizes))
    for idx, (fan_in, fan_out) in enumerate(sizes):
        bound = 1.0 / jnp.sqrt(fan_in)
        params[f"w{idx + 1}"] = jax.random.uniform(
            keys[2 * idx], (fan_in, fan_out),
            minval=-bound, maxval=bound, dtype=jnp.float32)
        params[f"b{idx + 1}"] = jax.random.uniform(
            keys[2 * idx + 1], (1, fan_out),
            minval=-bound, maxval=bound, dtype=jnp.float32)
    return params


def _reference_forward(x, p, compute_dtype):
    """Pure-JAX reference (compute_dtype matmul inputs, f32 accumulation)."""
    relu = lambda t: jnp.maximum(t, 0.0)

    def lin(t, wk, bk):
        return jnp.dot(t.astype(compute_dtype), p[wk].astype(compute_dtype),
                       preferred_element_type=jnp.float32) + p[bk]

    h = relu(lin(x, "w1", "b1"))
    h = relu(lin(h, "w2", "b2"))
    enc = lin(h, "w3", "b3")
    d = relu(lin(enc, "w4", "b4"))
    d = relu(lin(d, "w5", "b5"))
    dec = lin(d, "w6", "b6")
    return enc, dec


if __name__ == "__main__":
    input_dim = 64       # number of SNP features per sample
    encoding_dim = 32
    batch = 16

    key = jax.random.PRNGKey(0)
    kx, kp = jax.random.split(key)
    x = jax.random.normal(kx, (batch, input_dim), dtype=jnp.float32)
    params = init_params(kp, input_dim, encoding_dim)

    prepared = prepare_params(params)              # hoisted: pad + bf16-cast once
    enc, dec = gwas_autoencoder_forward(x, prepared)
    enc = jax.block_until_ready(enc)
    dec = jax.block_until_ready(dec)

    assert enc.shape == (batch, encoding_dim)
    assert dec.shape == (batch, input_dim)

    # Check against a bf16-compute reference (matches kernel numerics) ...
    enc_b, dec_b = _reference_forward(x, params, jnp.bfloat16)
    assert jnp.allclose(enc, enc_b, atol=2.5e-2, rtol=2.5e-2), \
        float(jnp.max(jnp.abs(enc - enc_b)))
    assert jnp.allclose(dec, dec_b, atol=2.5e-2, rtol=2.5e-2), \
        float(jnp.max(jnp.abs(dec - dec_b)))

    # ... and against the true f32 PyTorch-equivalent with a looser tolerance.
    enc_f, dec_f = _reference_forward(x, params, jnp.float32)
    assert jnp.allclose(enc, enc_f, atol=6e-2, rtol=6e-2), \
        float(jnp.max(jnp.abs(enc - enc_f)))
    assert jnp.allclose(dec, dec_f, atol=6e-2, rtol=6e-2), \
        float(jnp.max(jnp.abs(dec - dec_f)))

    print("KERNEL_OK")
</pallas_src>

<mosaic_0001>
module attributes {stable_mosaic.version = 11 : i64} {
  func.func @_ae_kernel(%arg0: i32, %arg1: memref<16x128xbf16, #tpu.memory_space<vmem>>, %arg2: memref<128x256xbf16, #tpu.memory_space<vmem>>, %arg3: memref<1x256xf32, #tpu.memory_space<vmem>>, %arg4: memref<256x128xbf16, #tpu.memory_space<vmem>>, %arg5: memref<1x128xf32, #tpu.memory_space<vmem>>, %arg6: memref<128x128xbf16, #tpu.memory_space<vmem>>, %arg7: memref<1x128xf32, #tpu.memory_space<vmem>>, %arg8: memref<128x128xbf16, #tpu.memory_space<vmem>>, %arg9: memref<1x128xf32, #tpu.memory_space<vmem>>, %arg10: memref<128x256xbf16, #tpu.memory_space<vmem>>, %arg11: memref<1x256xf32, #tpu.memory_space<vmem>>, %arg12: memref<256x128xbf16, #tpu.memory_space<vmem>>, %arg13: memref<1x128xf32, #tpu.memory_space<vmem>>, %arg14: memref<16x128xf32, #tpu.memory_space<vmem>>, %arg15: memref<16x128xbf16, #tpu.memory_space<vmem>>) attributes {dimension_semantics = [#tpu.dimension_semantics<parallel>], iteration_bounds = array<i64: 1>, scalar_prefetch = 0 : i64, scratch_operands = 0 : i64, tpu.core_type = #tpu.core_type<tc>, window_params = [{transform_indices = @transform_0, window_bounds = array<i64: 16, 128>}, {pipeline_mode = #tpu.pipeline_mode<synchronous>, transform_indices = @transform_1, window_bounds = array<i64: 128, 256>}, {pipeline_mode = #tpu.pipeline_mode<synchronous>, transform_indices = @transform_2, window_bounds = array<i64: 1, 256>}, {pipeline_mode = #tpu.pipeline_mode<synchronous>, transform_indices = @transform_3, window_bounds = array<i64: 256, 128>}, {pipeline_mode = #tpu.pipeline_mode<synchronous>, transform_indices = @transform_4, window_bounds = array<i64: 1, 128>}, {pipeline_mode = #tpu.pipeline_mode<synchronous>, transform_indices = @transform_5, window_bounds = array<i64: 128, 128>}, {pipeline_mode = #tpu.pipeline_mode<synchronous>, transform_indices = @transform_6, window_bounds = array<i64: 1, 128>}, {pipeline_mode = #tpu.pipeline_mode<synchronous>, transform_indices = @transform_7, window_bounds = array<i64: 128, 128>}, {pipeline_mode = #tpu.pipeline_mode<synchronous>, transform_indices = @transform_8, window_bounds = array<i64: 1, 128>}, {pipeline_mode = #tpu.pipeline_mode<synchronous>, transform_indices = @transform_9, window_bounds = array<i64: 128, 256>}, {pipeline_mode = #tpu.pipeline_mode<synchronous>, transform_indices = @transform_10, window_bounds = array<i64: 1, 256>}, {pipeline_mode = #tpu.pipeline_mode<synchronous>, transform_indices = @transform_11, window_bounds = array<i64: 256, 128>}, {pipeline_mode = #tpu.pipeline_mode<synchronous>, transform_indices = @transform_12, window_bounds = array<i64: 1, 128>}, {transform_indices = @transform_13, window_bounds = array<i64: 16, 128>}, {transform_indices = @transform_14, window_bounds = array<i64: 16, 128>}]} {
    %c0 = arith.constant 0 : index
    %c0_0 = arith.constant 0 : index
    %0 = vector.load %arg1[%c0, %c0_0] : memref<16x128xbf16, #tpu.memory_space<vmem>>, vector<16x128xbf16>
    %c0_1 = arith.constant 0 : index
    %c0_2 = arith.constant 0 : index
    %1 = vector.load %arg2[%c0_1, %c0_2] : memref<128x256xbf16, #tpu.memory_space<vmem>>, vector<128x256xbf16>
    %cst = arith.constant dense<0.000000e+00> : vector<16x256xf32>
    %2 = tpu.matmul %0, %1, %cst {dimension_numbers = #tpu.dot_dimension_numbers<[1], [0], [0], [1], [0, 0, 1, 1], [], []>} : vector<16x128xbf16>, vector<128x256xbf16>, vector<16x256xf32> -> vector<16x256xf32>
    %c0_3 = arith.constant 0 : index
    %c0_4 = arith.constant 0 : index
    %3 = vector.load %arg3[%c0_3, %c0_4] : memref<1x256xf32, #tpu.memory_space<vmem>>, vector<1x256xf32>
    %4 = vector.broadcast %3 : vector<1x256xf32> to vector<16x256xf32>
    %5 = arith.addf %2, %4 : vector<16x256xf32>
    %cst_5 = arith.constant 0.000000e+00 : f32
    %6 = vector.broadcast %cst_5 : f32 to vector<16x256xf32>
    %7 = arith.maximumf %5, %6 : vector<16x256xf32>
    %8 = arith.truncf %7 : vector<16x256xf32> to vector<16x256xbf16>
    %c0_6 = arith.constant 0 : index
    %c0_7 = arith.constant 0 : index
    %9 = vector.load %arg4[%c0_6, %c0_7] : memref<256x128xbf16, #tpu.memory_space<vmem>>, vector<256x128xbf16>
    %cst_8 = arith.constant dense<0.000000e+00> : vector<16x128xf32>
    %10 = tpu.matmul %8, %9, %cst_8 {dimension_numbers = #tpu.dot_dimension_numbers<[1], [0], [0], [1], [0, 0, 1, 1], [], []>} : vector<16x256xbf16>, vector<256x128xbf16>, vector<16x128xf32> -> vector<16x128xf32>
    %c0_9 = arith.constant 0 : index
    %c0_10 = arith.constant 0 : index
    %11 = vector.load %arg5[%c0_9, %c0_10] : memref<1x128xf32, #tpu.memory_space<vmem>>, vector<1x128xf32>
    %12 = vector.broadcast %11 : vector<1x128xf32> to vector<16x128xf32>
    %13 = arith.addf %10, %12 : vector<16x128xf32>
    %cst_11 = arith.constant 0.000000e+00 : f32
    %14 = vector.broadcast %cst_11 : f32 to vector<16x128xf32>
    %15 = arith.maximumf %13, %14 : vector<16x128xf32>
    %16 = arith.truncf %15 : vector<16x128xf32> to vector<16x128xbf16>
    %c0_12 = arith.constant 0 : index
    %c0_13 = arith.constant 0 : index
    %17 = vector.load %arg6[%c0_12, %c0_13] : memref<128x128xbf16, #tpu.memory_space<vmem>>, vector<128x128xbf16>
    %cst_14 = arith.constant dense<0.000000e+00> : vector<16x128xf32>
    %18 = tpu.matmul %16, %17, %cst_14 {dimension_numbers = #tpu.dot_dimension_numbers<[1], [0], [0], [1], [0, 0, 1, 1], [], []>} : vector<16x128xbf16>, vector<128x128xbf16>, vector<16x128xf32> -> vector<16x128xf32>
    %c0_15 = arith.constant 0 : index
    %c0_16 = arith.constant 0 : index
    %19 = vector.load %arg7[%c0_15, %c0_16] : memref<1x128xf32, #tpu.memory_space<vmem>>, vector<1x128xf32>
    %20 = vector.broadcast %19 : vector<1x128xf32> to vector<16x128xf32>
    %21 = arith.addf %18, %20 : vector<16x128xf32>
    %c0_17 = arith.constant 0 : index
    %c0_18 = arith.constant 0 : index
    %22 = vector.load %arg14[%c0_17, %c0_18] : memref<16x128xf32, #tpu.memory_space<vmem>>, vector<16x128xf32>
    tpu.vector_store %arg14[%c0_17, %c0_18], %21 {strides = array<i32>} : memref<16x128xf32, #tpu.memory_space<vmem>>, vector<16x128xf32>,
    %23 = arith.truncf %21 : vector<16x128xf32> to vector<16x128xbf16>
    %c0_19 = arith.constant 0 : index
    %c0_20 = arith.constant 0 : index
    %24 = vector.load %arg8[%c0_19, %c0_20] : memref<128x128xbf16, #tpu.memory_space<vmem>>, vector<128x128xbf16>
    %cst_21 = arith.constant dense<0.000000e+00> : vector<16x128xf32>
    %25 = tpu.matmul %23, %24, %cst_21 {dimension_numbers = #tpu.dot_dimension_numbers<[1], [0], [0], [1], [0, 0, 1, 1], [], []>} : vector<16x128xbf16>, vector<128x128xbf16>, vector<16x128xf32> -> vector<16x128xf32>
    %c0_22 = arith.constant 0 : index
    %c0_23 = arith.constant 0 : index
    %26 = vector.load %arg9[%c0_22, %c0_23] : memref<1x128xf32, #tpu.memory_space<vmem>>, vector<1x128xf32>
    %27 = vector.broadcast %26 : vector<1x128xf32> to vector<16x128xf32>
    %28 = arith.addf %25, %27 : vector<16x128xf32>
    %cst_24 = arith.constant 0.000000e+00 : f32
    %29 = vector.broadcast %cst_24 : f32 to vector<16x128xf32>
    %30 = arith.maximumf %28, %29 : vector<16x128xf32>
    %31 = arith.truncf %30 : vector<16x128xf32> to vector<16x128xbf16>
    %c0_25 = arith.constant 0 : index
    %c0_26 = arith.constant 0 : index
    %32 = vector.load %arg10[%c0_25, %c0_26] : memref<128x256xbf16, #tpu.memory_space<vmem>>, vector<128x256xbf16>
    %cst_27 = arith.constant dense<0.000000e+00> : vector<16x256xf32>
    %33 = tpu.matmul %31, %32, %cst_27 {dimension_numbers = #tpu.dot_dimension_numbers<[1], [0], [0], [1], [0, 0, 1, 1], [], []>} : vector<16x128xbf16>, vector<128x256xbf16>, vector<16x256xf32> -> vector<16x256xf32>
    %c0_28 = arith.constant 0 : index
    %c0_29 = arith.constant 0 : index
    %34 = vector.load %arg11[%c0_28, %c0_29] : memref<1x256xf32, #tpu.memory_space<vmem>>, vector<1x256xf32>
    %35 = vector.broadcast %34 : vector<1x256xf32> to vector<16x256xf32>
    %36 = arith.addf %33, %35 : vector<16x256xf32>
    %cst_30 = arith.constant 0.000000e+00 : f32
    %37 = vector.broadcast %cst_30 : f32 to vector<16x256xf32>
    %38 = arith.maximumf %36, %37 : vector<16x256xf32>
    %39 = arith.truncf %38 : vector<16x256xf32> to vector<16x256xbf16>
    %c0_31 = arith.constant 0 : index
    %c0_32 = arith.constant 0 : index
    %40 = vector.load %arg12[%c0_31, %c0_32] : memref<256x128xbf16, #tpu.memory_space<vmem>>, vector<256x128xbf16>
    %cst_33 = arith.constant dense<0.000000e+00> : vector<16x128xf32>
    %41 = tpu.matmul %39, %40, %cst_33 {dimension_numbers = #tpu.dot_dimension_numbers<[1], [0], [0], [1], [0, 0, 1, 1], [], []>} : vector<16x256xbf16>, vector<256x128xbf16>, vector<16x128xf32> -> vector<16x128xf32>
    %c0_34 = arith.constant 0 : index
    %c0_35 = arith.constant 0 : index
    %42 = vector.load %arg13[%c0_34, %c0_35] : memref<1x128xf32, #tpu.memory_space<vmem>>, vector<1x128xf32>
    %43 = vector.broadcast %42 : vector<1x128xf32> to vector<16x128xf32>
    %44 = arith.addf %41, %43 : vector<16x128xf32>
    %45 = arith.truncf %44 : vector<16x128xf32> to vector<16x128xbf16>
    %c0_36 = arith.constant 0 : index
    %c0_37 = arith.constant 0 : index
    %46 = vector.load %arg15[%c0_36, %c0_37] : memref<16x128xbf16, #tpu.memory_space<vmem>>, vector<16x128xbf16>
    tpu.vector_store %arg15[%c0_36, %c0_37], %45 {strides = array<i32>} : memref<16x128xbf16, #tpu.memory_space<vmem>>, vector<16x128xbf16>,
    return
  }
  func.func @transform_0(%arg0: i32) -> (i32, i32) {
    %c0_i32 = arith.constant 0 : i32
    %c0_i32_0 = arith.constant 0 : i32
    return %arg0, %c0_i32 : i32, i32
  }
  func.func @transform_1(%arg0: i32) -> (i32, i32) {
    %c0_i32 = arith.constant 0 : i32
    %c0_i32_0 = arith.constant 0 : i32
    %c0_i32_1 = arith.constant 0 : i32
    return %c0_i32, %c0_i32_0 : i32, i32
  }
  func.func @transform_2(%arg0: i32) -> (i32, i32) {
    %c0_i32 = arith.constant 0 : i32
    %c0_i32_0 = arith.constant 0 : i32
    %c0_i32_1 = arith.constant 0 : i32
    return %c0_i32, %c0_i32_0 : i32, i32
  }
  func.func @transform_3(%arg0: i32) -> (i32, i32) {
    %c0_i32 = arith.constant 0 : i32
    %c0_i32_0 = arith.constant 0 : i32
    %c0_i32_1 = arith.constant 0 : i32
    return %c0_i32, %c0_i32_0 : i32, i32
  }
  func.func @transform_4(%arg0: i32) -> (i32, i32) {
    %c0_i32 = arith.constant 0 : i32
    %c0_i32_0 = arith.constant 0 : i32
    %c0_i32_1 = arith.constant 0 : i32
    return %c0_i32, %c0_i32_0 : i32, i32
  }
  func.func @transform_5(%arg0: i32) -> (i32, i32) {
    %c0_i32 = arith.constant 0 : i32
    %c0_i32_0 = arith.constant 0 : i32
    %c0_i32_1 = arith.constant 0 : i32
    return %c0_i32, %c0_i32_0 : i32, i32
  }
  func.func @transform_6(%arg0: i32) -> (i32, i32) {
    %c0_i32 = arith.constant 0 : i32
    %c0_i32_0 = arith.constant 0 : i32
    %c0_i32_1 = arith.constant 0 : i32
    return %c0_i32, %c0_i32_0 : i32, i32
  }
  func.func @transform_7(%arg0: i32) -> (i32, i32) {
    %c0_i32 = arith.constant 0 : i32
    %c0_i32_0 = arith.constant 0 : i32
    %c0_i32_1 = arith.constant 0 : i32
    return %c0_i32, %c0_i32_0 : i32, i32
  }
  func.func @transform_8(%arg0: i32) -> (i32, i32) {
    %c0_i32 = arith.constant 0 : i32
    %c0_i32_0 = arith.constant 0 : i32
    %c0_i32_1 = arith.constant 0 : i32
    return %c0_i32, %c0_i32_0 : i32, i32
  }
  func.func @transform_9(%arg0: i32) -> (i32, i32) {
    %c0_i32 = arith.constant 0 : i32
    %c0_i32_0 = arith.constant 0 : i32
    %c0_i32_1 = arith.constant 0 : i32
    return %c0_i32, %c0_i32_0 : i32, i32
  }
  func.func @transform_10(%arg0: i32) -> (i32, i32) {
    %c0_i32 = arith.constant 0 : i32
    %c0_i32_0 = arith.constant 0 : i32
    %c0_i32_1 = arith.constant 0 : i32
    return %c0_i32, %c0_i32_0 : i32, i32
  }
  func.func @transform_11(%arg0: i32) -> (i32, i32) {
    %c0_i32 = arith.constant 0 : i32
    %c0_i32_0 = arith.constant 0 : i32
    %c0_i32_1 = arith.constant 0 : i32
    return %c0_i32, %c0_i32_0 : i32, i32
  }
  func.func @transform_12(%arg0: i32) -> (i32, i32) {
    %c0_i32 = arith.constant 0 : i32
    %c0_i32_0 = arith.constant 0 : i32
    %c0_i32_1 = arith.constant 0 : i32
    return %c0_i32, %c0_i32_0 : i32, i32
  }
  func.func @transform_13(%arg0: i32) -> (i32, i32) {
    %c0_i32 = arith.constant 0 : i32
    %c0_i32_0 = arith.constant 0 : i32
    return %arg0, %c0_i32 : i32, i32
  }
  func.func @transform_14(%arg0: i32) -> (i32, i32) {
    %c0_i32 = arith.constant 0 : i32
    %c0_i32_0 = arith.constant 0 : i32
    return %arg0, %c0_i32 : i32, i32
  }
}

module attributes {stable_mosaic.version = 11 : i64} {
  func.func @_ae_kernel(%arg0: i32, %arg1: memref<16x128xbf16, #tpu.memory_space<vmem>>, %arg2: memref<128x256xbf16, #tpu.memory_space<vmem>>, %arg3: memref<1x256xf32, #tpu.memory_space<vmem>>, %arg4: memref<256x128xbf16, #tpu.memory_space<vmem>>, %arg5: memref<1x128xf32, #tpu.memory_space<vmem>>, %arg6: memref<128x128xbf16, #tpu.memory_space<vmem>>, %arg7: memref<1x128xf32, #tpu.memory_space<vmem>>, %arg8: memref<128x128xbf16, #tpu.memory_space<vmem>>, %arg9: memref<1x128xf32, #tpu.memory_space<vmem>>, %arg10: memref<128x256xbf16, #tpu.memory_space<vmem>>, %arg11: memref<1x256xf32, #tpu.memory_space<vmem>>, %arg12: memref<256x128xbf16, #tpu.memory_space<vmem>>, %arg13: memref<1x128xf32, #tpu.memory_space<vmem>>, %arg14: memref<16x128xf32, #tpu.memory_space<vmem>>, %arg15: memref<16x128xbf16, #tpu.memory_space<vmem>>) attributes {dimension_semantics = [#tpu.dimension_semantics<parallel>], iteration_bounds = array<i64: 1>, scalar_prefetch = 0 : i64, scratch_operands = 0 : i64, tpu.core_type = #tpu.core_type<tc>, window_params = [{transform_indices = @transform_0, window_bounds = array<i64: 16, 128>}, {pipeline_mode = #tpu.pipeline_mode<synchronous>, transform_indices = @transform_1, window_bounds = array<i64: 128, 256>}, {pipeline_mode = #tpu.pipeline_mode<synchronous>, transform_indices = @transform_2, window_bounds = array<i64: 1, 256>}, {pipeline_mode = #tpu.pipeline_mode<synchronous>, transform_indices = @transform_3, window_bounds = array<i64: 256, 128>}, {pipeline_mode = #tpu.pipeline_mode<synchronous>, transform_indices = @transform_4, window_bounds = array<i64: 1, 128>}, {pipeline_mode = #tpu.pipeline_mode<synchronous>, transform_indices = @transform_5, window_bounds = array<i64: 128, 128>}, {pipeline_mode = #tpu.pipeline_mode<synchronous>, transform_indices = @transform_6, window_bounds = array<i64: 1, 128>}, {pipeline_mode = #tpu.pipeline_mode<synchronous>, transform_indices = @transform_7, window_bounds = array<i64: 128, 128>}, {pipeline_mode = #tpu.pipeline_mode<synchronous>, transform_indices = @transform_8, window_bounds = array<i64: 1, 128>}, {pipeline_mode = #tpu.pipeline_mode<synchronous>, transform_indices = @transform_9, window_bounds = array<i64: 128, 256>}, {pipeline_mode = #tpu.pipeline_mode<synchronous>, transform_indices = @transform_10, window_bounds = array<i64: 1, 256>}, {pipeline_mode = #tpu.pipeline_mode<synchronous>, transform_indices = @transform_11, window_bounds = array<i64: 256, 128>}, {pipeline_mode = #tpu.pipeline_mode<synchronous>, transform_indices = @transform_12, window_bounds = array<i64: 1, 128>}, {transform_indices = @transform_13, window_bounds = array<i64: 16, 128>}, {transform_indices = @transform_14, window_bounds = array<i64: 16, 128>}]} {
    %c0 = arith.constant 0 : index
    %c0_0 = arith.constant 0 : index
    %0 = vector.load %arg1[%c0, %c0_0] : memref<16x128xbf16, #tpu.memory_space<vmem>>, vector<16x128xbf16>
    %c0_1 = arith.constant 0 : index
    %c0_2 = arith.constant 0 : index
    %1 = vector.load %arg2[%c0_1, %c0_2] : memref<128x256xbf16, #tpu.memory_space<vmem>>, vector<128x256xbf16>
    %cst = arith.constant dense<0.000000e+00> : vector<16x256xf32>
    %2 = tpu.matmul %0, %1, %cst {dimension_numbers = #tpu.dot_dimension_numbers<[1], [0], [0], [1], [0, 0, 1, 1], [], []>} : vector<16x128xbf16>, vector<128x256xbf16>, vector<16x256xf32> -> vector<16x256xf32>
    %c0_3 = arith.constant 0 : index
    %c0_4 = arith.constant 0 : index
    %3 = vector.load %arg3[%c0_3, %c0_4] : memref<1x256xf32, #tpu.memory_space<vmem>>, vector<1x256xf32>
    %4 = vector.broadcast %3 : vector<1x256xf32> to vector<16x256xf32>
    %5 = arith.addf %2, %4 : vector<16x256xf32>
    %cst_5 = arith.constant 0.000000e+00 : f32
    %6 = vector.broadcast %cst_5 : f32 to vector<16x256xf32>
    %7 = arith.maximumf %5, %6 : vector<16x256xf32>
    %8 = arith.truncf %7 : vector<16x256xf32> to vector<16x256xbf16>
    %c0_6 = arith.constant 0 : index
    %c0_7 = arith.constant 0 : index
    %9 = vector.load %arg4[%c0_6, %c0_7] : memref<256x128xbf16, #tpu.memory_space<vmem>>, vector<256x128xbf16>
    %cst_8 = arith.constant dense<0.000000e+00> : vector<16x128xf32>
    %10 = tpu.matmul %8, %9, %cst_8 {dimension_numbers = #tpu.dot_dimension_numbers<[1], [0], [0], [1], [0, 0, 1, 1], [], []>} : vector<16x256xbf16>, vector<256x128xbf16>, vector<16x128xf32> -> vector<16x128xf32>
    %c0_9 = arith.constant 0 : index
    %c0_10 = arith.constant 0 : index
    %11 = vector.load %arg5[%c0_9, %c0_10] : memref<1x128xf32, #tpu.memory_space<vmem>>, vector<1x128xf32>
    %12 = vector.broadcast %11 : vector<1x128xf32> to vector<16x128xf32>
    %13 = arith.addf %10, %12 : vector<16x128xf32>
    %cst_11 = arith.constant 0.000000e+00 : f32
    %14 = vector.broadcast %cst_11 : f32 to vector<16x128xf32>
    %15 = arith.maximumf %13, %14 : vector<16x128xf32>
    %16 = arith.truncf %15 : vector<16x128xf32> to vector<16x128xbf16>
    %c0_12 = arith.constant 0 : index
    %c0_13 = arith.constant 0 : index
    %17 = vector.load %arg6[%c0_12, %c0_13] : memref<128x128xbf16, #tpu.memory_space<vmem>>, vector<128x128xbf16>
    %cst_14 = arith.constant dense<0.000000e+00> : vector<16x128xf32>
    %18 = tpu.matmul %16, %17, %cst_14 {dimension_numbers = #tpu.dot_dimension_numbers<[1], [0], [0], [1], [0, 0, 1, 1], [], []>} : vector<16x128xbf16>, vector<128x128xbf16>, vector<16x128xf32> -> vector<16x128xf32>
    %c0_15 = arith.constant 0 : index
    %c0_16 = arith.constant 0 : index
    %19 = vector.load %arg7[%c0_15, %c0_16] : memref<1x128xf32, #tpu.memory_space<vmem>>, vector<1x128xf32>
    %20 = vector.broadcast %19 : vector<1x128xf32> to vector<16x128xf32>
    %21 = arith.addf %18, %20 : vector<16x128xf32>
    %c0_17 = arith.constant 0 : index
    %c0_18 = arith.constant 0 : index
    %22 = vector.load %arg14[%c0_17, %c0_18] : memref<16x128xf32, #tpu.memory_space<vmem>>, vector<16x128xf32>
    tpu.vector_store %arg14[%c0_17, %c0_18], %21 {strides = array<i32>} : memref<16x128xf32, #tpu.memory_space<vmem>>, vector<16x128xf32>,
    %23 = arith.truncf %21 : vector<16x128xf32> to vector<16x128xbf16>
    %c0_19 = arith.constant 0 : index
    %c0_20 = arith.constant 0 : index
    %24 = vector.load %arg8[%c0_19, %c0_20] : memref<128x128xbf16, #tpu.memory_space<vmem>>, vector<128x128xbf16>
    %cst_21 = arith.constant dense<0.000000e+00> : vector<16x128xf32>
    %25 = tpu.matmul %23, %24, %cst_21 {dimension_numbers = #tpu.dot_dimension_numbers<[1], [0], [0], [1], [0, 0, 1, 1], [], []>} : vector<16x128xbf16>, vector<128x128xbf16>, vector<16x128xf32> -> vector<16x128xf32>
    %c0_22 = arith.constant 0 : index
    %c0_23 = arith.constant 0 : index
    %26 = vector.load %arg9[%c0_22, %c0_23] : memref<1x128xf32, #tpu.memory_space<vmem>>, vector<1x128xf32>
    %27 = vector.broadcast %26 : vector<1x128xf32> to vector<16x128xf32>
    %28 = arith.addf %25, %27 : vector<16x128xf32>
    %cst_24 = arith.constant 0.000000e+00 : f32
    %29 = vector.broadcast %cst_24 : f32 to vector<16x128xf32>
    %30 = arith.maximumf %28, %29 : vector<16x128xf32>
    %31 = arith.truncf %30 : vector<16x128xf32> to vector<16x128xbf16>
    %c0_25 = arith.constant 0 : index
    %c0_26 = arith.constant 0 : index
    %32 = vector.load %arg10[%c0_25, %c0_26] : memref<128x256xbf16, #tpu.memory_space<vmem>>, vector<128x256xbf16>
    %cst_27 = arith.constant dense<0.000000e+00> : vector<16x256xf32>
    %33 = tpu.matmul %31, %32, %cst_27 {dimension_numbers = #tpu.dot_dimension_numbers<[1], [0], [0], [1], [0, 0, 1, 1], [], []>} : vector<16x128xbf16>, vector<128x256xbf16>, vector<16x256xf32> -> vector<16x256xf32>
    %c0_28 = arith.constant 0 : index
    %c0_29 = arith.constant 0 : index
    %34 = vector.load %arg11[%c0_28, %c0_29] : memref<1x256xf32, #tpu.memory_space<vmem>>, vector<1x256xf32>
    %35 = vector.broadcast %34 : vector<1x256xf32> to vector<16x256xf32>
    %36 = arith.addf %33, %35 : vector<16x256xf32>
    %cst_30 = arith.constant 0.000000e+00 : f32
    %37 = vector.broadcast %cst_30 : f32 to vector<16x256xf32>
    %38 = arith.maximumf %36, %37 : vector<16x256xf32>
    %39 = arith.truncf %38 : vector<16x256xf32> to vector<16x256xbf16>
    %c0_31 = arith.constant 0 : index
    %c0_32 = arith.constant 0 : index
    %40 = vector.load %arg12[%c0_31, %c0_32] : memref<256x128xbf16, #tpu.memory_space<vmem>>, vector<256x128xbf16>
    %cst_33 = arith.constant dense<0.000000e+00> : vector<16x128xf32>
    %41 = tpu.matmul %39, %40, %cst_33 {dimension_numbers = #tpu.dot_dimension_numbers<[1], [0], [0], [1], [0, 0, 1, 1], [], []>} : vector<16x256xbf16>, vector<256x128xbf16>, vector<16x128xf32> -> vector<16x128xf32>
    %c0_34 = arith.constant 0 : index
    %c0_35 = arith.constant 0 : index
    %42 = vector.load %arg13[%c0_34, %c0_35] : memref<1x128xf32, #tpu.memory_space<vmem>>, vector<1x128xf32>
    %43 = vector.broadcast %42 : vector<1x128xf32> to vector<16x128xf32>
    %44 = arith.addf %41, %43 : vector<16x128xf32>
    %45 = arith.truncf %44 : vector<16x128xf32> to vector<16x128xbf16>
    %c0_36 = arith.constant 0 : index
    %c0_37 = arith.constant 0 : index
    %46 = vector.load %arg15[%c0_36, %c0_37] : memref<16x128xbf16, #tpu.memory_space<vmem>>, vector<16x128xbf16>
    tpu.vector_store %arg15[%c0_36, %c0_37], %45 {strides = array<i32>} : memref<16x128xbf16, #tpu.memory_space<vmem>>, vector<16x128xbf16>,
    return
  }
  func.func @transform_0(%arg0: i32) -> (i32, i32) {
    %c0_i32 = arith.constant 0 : i32
    %c0_i32_0 = arith.constant 0 : i32
    return %arg0, %c0_i32 : i32, i32
  }
  func.func @transform_1(%arg0: i32) -> (i32, i32) {
    %c0_i32 = arith.constant 0 : i32
    %c0_i32_0 = arith.constant 0 : i32
    %c0_i32_1 = arith.constant 0 : i32
    return %c0_i32, %c0_i32_0 : i32, i32
  }
  func.func @transform_2(%arg0: i32) -> (i32, i32) {
    %c0_i32 = arith.constant 0 : i32
    %c0_i32_0 = arith.constant 0 : i32
    %c0_i32_1 = arith.constant 0 : i32
    return %c0_i32, %c0_i32_0 : i32, i32
  }
  func.func @transform_3(%arg0: i32) -> (i32, i32) {
    %c0_i32 = arith.constant 0 : i32
    %c0_i32_0 = arith.constant 0 : i32
    %c0_i32_1 = arith.constant 0 : i32
    return %c0_i32, %c0_i32_0 : i32, i32
  }
  func.func @transform_4(%arg0: i32) -> (i32, i32) {
    %c0_i32 = arith.constant 0 : i32
    %c0_i32_0 = arith.constant 0 : i32
    %c0_i32_1 = arith.constant 0 : i32
    return %c0_i32, %c0_i32_0 : i32, i32
  }
  func.func @transform_5(%arg0: i32) -> (i32, i32) {
    %c0_i32 = arith.constant 0 : i32
    %c0_i32_0 = arith.constant 0 : i32
    %c0_i32_1 = arith.constant 0 : i32
    return %c0_i32, %c0_i32_0 : i32, i32
  }
  func.func @transform_6(%arg0: i32) -> (i32, i32) {
    %c0_i32 = arith.constant 0 : i32
    %c0_i32_0 = arith.constant 0 : i32
    %c0_i32_1 = arith.constant 0 : i32
    return %c0_i32, %c0_i32_0 : i32, i32
  }
  func.func @transform_7(%arg0: i32) -> (i32, i32) {
    %c0_i32 = arith.constant 0 : i32
    %c0_i32_0 = arith.constant 0 : i32
    %c0_i32_1 = arith.constant 0 : i32
    return %c0_i32, %c0_i32_0 : i32, i32
  }
  func.func @transform_8(%arg0: i32) -> (i32, i32) {
    %c0_i32 = arith.constant 0 : i32
    %c0_i32_0 = arith.constant 0 : i32
    %c0_i32_1 = arith.constant 0 : i32
    return %c0_i32, %c0_i32_0 : i32, i32
  }
  func.func @transform_9(%arg0: i32) -> (i32, i32) {
    %c0_i32 = arith.constant 0 : i32
    %c0_i32_0 = arith.constant 0 : i32
    %c0_i32_1 = arith.constant 0 : i32
    return %c0_i32, %c0_i32_0 : i32, i32
  }
  func.func @transform_10(%arg0: i32) -> (i32, i32) {
    %c0_i32 = arith.constant 0 : i32
    %c0_i32_0 = arith.constant 0 : i32
    %c0_i32_1 = arith.constant 0 : i32
    return %c0_i32, %c0_i32_0 : i32, i32
  }
  func.func @transform_11(%arg0: i32) -> (i32, i32) {
    %c0_i32 = arith.constant 0 : i32
    %c0_i32_0 = arith.constant 0 : i32
    %c0_i32_1 = arith.constant 0 : i32
    return %c0_i32, %c0_i32_0 : i32, i32
  }
  func.func @transform_12(%arg0: i32) -> (i32, i32) {
    %c0_i32 = arith.constant 0 : i32
    %c0_i32_0 = arith.constant 0 : i32
    %c0_i32_1 = arith.constant 0 : i32
    return %c0_i32, %c0_i32_0 : i32, i32
  }
  func.func @transform_13(%arg0: i32) -> (i32, i32) {
    %c0_i32 = arith.constant 0 : i32
    %c0_i32_0 = arith.constant 0 : i32
    return %arg0, %c0_i32 : i32, i32
  }
  func.func @transform_14(%arg0: i32) -> (i32, i32) {
    %c0_i32 = arith.constant 0 : i32
    %c0_i32_0 = arith.constant 0 : i32
    return %arg0, %c0_i32 : i32, i32
  }
}

</mosaic_0001>

<bundles_post_ra>
// kernel: tpu_custom_call.1
= control target key start
LH: loop header
LB: loop body
LE: loop exit
PB: predicated region body
PF: predicated region fallthrough
CT: control target
= control target key end

     0   :  { %20 = vsyncpa [#allocation3], 0  ;;  %s1832_s0 = inlined_call_operand.hbm [shape: bf16[16,128], index: 0, kind: input, shape index: {}]   ;;  %s1833_s1 = inlined_call_operand.hbm [shape: bf16[128,256], index: 1, kind: input, shape index: {}]   ;;  %s1834_s2 = inlined_call_operand.hbm [shape: f32[1,256], index: 2, kind: input, shape index: {}]   ;;  %s1835_s3 = inlined_call_operand.hbm [shape: bf16[256,128], index: 3, kind: input, shape index: {}]   ;;  %s1836_s4 = inlined_call_operand.vmem [shape: f32[1,128], index: 4, kind: input, shape index: {}]   ;;  %s1837_s5 = inlined_call_operand.hbm [shape: bf16[128,128], index: 5, kind: input, shape index: {}]   ;;  %s1838_s6 = inlined_call_operand.vmem [shape: f32[1,128], index: 6, kind: input, shape index: {}]   ;;  %s1839_s7 = inlined_call_operand.hbm [shape: bf16[128,128], index: 7, kind: input, shape index: {}]   ;;  %s1840_s8 = inlined_call_operand.vmem [shape: f32[1,128], index: 8, kind: input, shape index: {}]   ;;  %s1841_s9 = inlined_call_operand.hbm [shape: bf16[128,256], index: 9, kind: input, shape index: {}]   ;;  %s1842_s10 = inlined_call_operand.vmem [shape: f32[1,256], index: 10, kind: input, shape index: {}]   ;;  %s1843_s11 = inlined_call_operand.hbm [shape: bf16[256,128], index: 11, kind: input, shape index: {}]   ;;  %s1844_s12 = inlined_call_operand.vmem [shape: f32[1,128], index: 12, kind: input, shape index: {}]   ;;  %s1845_s13 = inlined_call_operand.hbm [shape: f32[16,128], index: 13, kind: output, shape index: {0}]   ;;  %s1846_s14 = inlined_call_operand.hbm [shape: bf16[16,128], index: 14, kind: output, shape index: {1}]  }
   0x1   :  { %21 = vsyncpa [#allocation6], 0 }
   0x2   :  { %22 = vsyncpa [#allocation9], 0 }
   0x3   :  { %23 = vsyncpa [#allocation12], 0 }
   0x4   :  { %24 = vsyncpa [#allocation15], 0 }
   0x5   :  { %25 = vsyncpa [#allocation4], 0  ;;  %s44_s15 = sshll.u32 %s1833_s1, 4  ;;  %s45_s15 = int_to_ptr.hbm [resolvable:$true] %s44_s15 }
   0x6   :  { %26 = vsyncpa [#allocation18], 0  ;;  %s1671_s16 = smov [#allocation5]   ;;  %s1672_s18 = smov 128  }
   0x7   :  { %s46_s17 = sshll.u32 %s1671_s16, 4  ;;  %s1673_s19 = smov 8   ;;  %s47_s17 = int_to_ptr.vmem [resolvable:$true] %s46_s17 }
   0x8   :  { %52 = dma.hbm_to_vmem [thread:$0]  %s45_s15, 2048, %s47_s17, [#allocation6], %s1672_s18, %s1672_s18, %s1673_s19  }
   0x9   :  { %s68_s22 = sshll.u32 %s1835_s3, 4  ;;  %s1674_s23 = smov [#allocation8]   ;;  %s69_s22 = int_to_ptr.hbm [resolvable:$true] %s68_s22 }
   0xa   :  { %s70_s24 = sshll.u32 %s1674_s23, 4  ;;  %s98_s26 = sshll.u32 %s1839_s7, 4  ;;  %s71_s24 = int_to_ptr.vmem [resolvable:$true] %s70_s24  ;;  %s99_s26 = int_to_ptr.hbm [resolvable:$true] %s98_s26 }
   0xb   :  { %s1675_s27 = smov 64   ;;  %s1676_s28 = smov 4  }
   0xc   :  { %76 = dma.hbm_to_vmem [thread:$0]  %s69_s22, 2048, %s71_s24, [#allocation9], %s1675_s27, %s1675_s27, %s1676_s28  }
   0xd   :  { %s31_s15 = sshll.u32 %s1832_s0, 4  ;;  %s1677_s3 = smov [#allocation11]   ;;  %s32_s15 = int_to_ptr.hbm [resolvable:$true] %s31_s15 }
   0xe   :  { %s100_s16 = sshll.u32 %s1677_s3, 4  ;;  %s1678_s7 = smov [#allocation2]   ;;  %s101_s16 = int_to_ptr.vmem [resolvable:$true] %s100_s16 }
   0xf   :  { %106 = dma.hbm_to_vmem [thread:$0]  %s99_s26, 1024, %s101_s16, [#allocation12], %s1675_s27, %s1675_s27, %s1676_s28  }
  0x10   :  { %s33_s17 = sshll.u32 %s1678_s7, 4  ;;  %s58_s23 = sshll.u32 %s1834_s2, 4  ;;  %s34_s17 = int_to_ptr.vmem [resolvable:$true] %s33_s17  ;;  %s59_s23 = int_to_ptr.hbm [resolvable:$true] %s58_s23 }
  0x11   :  { %39 = dma.hbm_to_vmem [thread:$0]  %s32_s15, 128, %s34_s17, [#allocation3], %s1675_s27, %s1675_s27, %s1676_s28  }
  0x12   :  { %s83_s24 = sshll.u32 %s1837_s5, 4  ;;  %s1679_s25 = smov [#allocation7]   ;;  %s84_s24 = int_to_ptr.hbm [resolvable:$true] %s83_s24 }
  0x13   :  { %s60_s1 = sshll.u32 %s1679_s25, 4  ;;  %s1680_s26 = smov [#allocation10]   ;;  %s61_s1 = int_to_ptr.vmem [resolvable:$true] %s60_s1 }
  0x14   :  { %63 = dma.hbm_to_vmem [thread:$0]  %s59_s23, 32, %s61_s1, [#allocation6]  }
  0x15   :  { %s85_s29 = sshll.u32 %s1680_s26, 4  ;;  %s113_s2 = sshll.u32 %s1841_s9, 4  ;;  %s86_s29 = int_to_ptr.vmem [resolvable:$true] %s85_s29  ;;  %s114_s2 = int_to_ptr.hbm [resolvable:$true] %s113_s2 }
  0x16   :  { %91 = dma.hbm_to_vmem [thread:$0]  %s84_s24, 1024, %s86_s29, [#allocation9], %s1675_s27, %s1675_s27, %s1676_s28  }
  0x17   :  { %s128_s5 = sshll.u32 %s1843_s11, 4  ;;  %s1681_s7 = smov [#allocation13]   ;;  %s129_s5 = int_to_ptr.hbm [resolvable:$true] %s128_s5 }
  0x18   :  { %s115_s17 = sshll.u32 %s1681_s7, 4  ;;  %s1682_s20 = smov [#allocation14]   ;;  %s116_s17 = int_to_ptr.vmem [resolvable:$true] %s115_s17 }
  0x19   :  { %121 = dma.hbm_to_vmem [thread:$0]  %s114_s2, 2048, %s116_s17, [#allocation12], %s1672_s18, %s1672_s18, %s1673_s19  }
  0x1a   :  { %s130_s9 = sshll.u32 %s1682_s20, 4  ;;  %s131_s9 = int_to_ptr.vmem [resolvable:$true] %s130_s9 }
  0x1b   :  { %136 = dma.hbm_to_vmem [thread:$0]  %s129_s5, 2048, %s131_s9, [#allocation15], %s1675_s27, %s1675_s27, %s1676_s28  }
  0x1c   :  { %1657 = dma.done.wait [#allocation3], 128  }
  0x1d   :  { %1658 = vsyncadd [#allocation3], 4294967168 }
  0x1e   :  { %1659 = dma.done.wait [#allocation6], 2080  }
  0x1f   :  { %1660 = vsyncadd [#allocation6], 4294965216 }
  0x20   :  { %1661 = dma.done.wait [#allocation9], 3072  }
  0x21   :  { %1662 = vsyncadd [#allocation9], 4294964224 }
  0x22   :  { %1663 = dma.done.wait [#allocation12], 3072  }
  0x23   :  { %1664 = vsyncadd [#allocation12], 4294964224 }
  0x24   :  { %1665 = dma.done.wait [#allocation15], 2048  }
  0x25   :  { %1666 = vsyncadd [#allocation15], 4294965248  ;;  %v1051_v0 = vld [vmem:[#allocation5 + $0x70] sm:$0xf]  ;;  %v1329_v1 = vld [vmem:[#allocation5 + $0x74] sm:$0xf0] }
  0x26   :  { %v1328_v2 = vld [vmem:[#allocation5 + $0x74] sm:$0xf]  ;;  %v1052_v3 = vor.u32 %v1329_v1, %v1051_v0  ;;  %v1053_v4 = vld [vmem:[#allocation5 + $0x78] sm:$0xf0]  ;;  %v1043_v5 = vld [vmem:[#allocation5 + $0x60] sm:$0xf] }
  0x27   :  { %v1327_v6 = vld [vmem:[#allocation5 + $0x64] sm:$0xf0]  ;;  %v1056_v7 = vor.u32 %v1328_v2, %v1053_v4  ;;  %v1326_v8 = vld [vmem:[#allocation5 + $0x64] sm:$0xf]  ;;  %v1045_v9 = vld [vmem:[#allocation5 + $0x68] sm:$0xf0] }
  0x28   :  { %281 = vmatpush.bf16.msra.mxu0 %v1052_v3  ;;  %v1044_v10 = vor.u32 %v1327_v6, %v1043_v5  ;;  %v1048_v11 = vor.u32 %v1326_v8, %v1045_v9  ;;  %v1035_v12 = vld [vmem:[#allocation5 + $0x50] sm:$0xf]  ;;  %v1325_v13 = vld [vmem:[#allocation5 + $0x54] sm:$0xf0]  ;;  %v1324_v14 = vld [vmem:[#allocation5 + $0x54] sm:$0xf] }
  0x29   :  { %295 = vmatpush.bf16.msra.mxu1 %v1056_v7  ;;  %v1037_v15 = vld [vmem:[#allocation5 + $0x58] sm:$0xf0]  ;;  %v1036_v16 = vor.u32 %v1325_v13, %v1035_v12  ;;  %v1027_v18 = vld [vmem:[#allocation5 + $0x40] sm:$0xf]  ;;  %v1323_v19 = vld [vmem:[#allocation5 + $0x44] sm:$0xf0] }
  0x2a   :  { %v1040_v17 = vor.u32 %v1324_v14, %v1037_v15  ;;  %v1322_v20 = vld [vmem:[#allocation5 + $0x44] sm:$0xf]  ;;  %v1029_v21 = vld [vmem:[#allocation5 + $0x48] sm:$0xf0]  ;;  %v1028_v22 = vor.u32 %v1323_v19, %v1027_v18  ;;  %v1337_v23 = vld [vmem:[#allocation8 + $0x38] sm:$0xff]  ;;  %s1683_s24 = smov [#allocation16]  }
  0x2b   :  { %v1345_v24 = vld [vmem:[#allocation8 + $0x78] sm:$0xff]  ;;  %v1032_v25 = vor.u32 %v1322_v20, %v1029_v21  ;;  %v1019_v26 = vld [vmem:[#allocation5 + $0x30] sm:$0xf]  ;;  %v1320_v28 = vld [vmem:[#allocation5 + $0x34] sm:$0xf]  ;;  %447 = vmatpush.bf16.msra.mxu2 %v1337_v23  ;;  %s954_s26 = sshll.u32 %s1845_s13, 4  ;;  %s955_s26 = int_to_ptr.hbm [resolvable:$true] %s954_s26 }
  0x2c   :  { %282 = vmatpush.bf16.msra.mxu0 %v1044_v10  ;;  %v1321_v27 = vld [vmem:[#allocation5 + $0x34] sm:$0xf0]  ;;  %v1021_v29 = vld [vmem:[#allocation5 + $0x38] sm:$0xf0]  ;;  %461 = vmatpush.bf16.msra.mxu3 %v1345_v24  ;;  %v1011_v34 = vld [vmem:[#allocation5 + $0x20] sm:$0xf] }
  0x2d   :  { %296 = vmatpush.bf16.msra.mxu1 %v1048_v11  ;;  %v1336_v30 = vld [vmem:[#allocation8 + $0x30] sm:$0xff]  ;;  %v1020_v32 = vor.u32 %v1321_v27, %v1019_v26  ;;  %v1024_v33 = vor.u32 %v1320_v28, %v1021_v29  ;;  %v1319_v35 = vld [vmem:[#allocation5 + $0x24] sm:$0xf0]  ;;  %v1318_v36 = vld [vmem:[#allocation5 + $0x24] sm:$0xf]  ;;  %s1684_s3 = smov [#allocation17]  }
  0x2e   :  { %v1344_v31 = vld [vmem:[#allocation8 + $0x70] sm:$0xff]  ;;  %v1013_v37 = vld [vmem:[#allocation5 + $0x28] sm:$0xf0]  ;;  %v1012_v40 = vor.u32 %v1319_v35, %v1011_v34  ;;  %v1005_v45 = vld [vmem:[#allocation5 + $0x18] sm:$0xf0]  ;;  %s965_s2 = sshll.u32 %s1684_s3, 4  ;;  %s966_s2 = int_to_ptr.vmem [resolvable:$true] %s965_s2 }
  0x2f   :  { %448 = vmatpush.bf16.msra.mxu2 %v1336_v30  ;;  %v1335_v38 = vld [vmem:[#allocation8 + $0x28] sm:$0xff]  ;;  %v1016_v41 = vor.u32 %v1318_v36, %v1013_v37  ;;  %v1317_v43 = vld [vmem:[#allocation5 + $0x14] sm:$0xf0]  ;;  %v1316_v44 = vld [vmem:[#allocation5 + $0x14] sm:$0xf]  ;;  %s967_s16 = sshll.u32 %s1846_s14, 4  ;;  %s968_s16 = int_to_ptr.hbm [resolvable:$true] %s967_s16 }
  0x30   :  { %283 = vmatpush.bf16.msra.mxu0 %v1036_v16  ;;  %462 = vmatpush.bf16.msra.mxu3 %v1344_v31  ;;  %v1343_v39 = vld [vmem:[#allocation8 + $0x68] sm:$0xff]  ;;  %v1334_v46 = vld [vmem:[#allocation8 + $0x20] sm:$0xff]  ;;  %v1008_v49 = vor.u32 %v1316_v44, %v1005_v45  ;;  %v1313_v56 = vld [vmem:[#allocation2] sm:$0xff] }
  0x31   :  { %297 = vmatpush.bf16.msra.mxu1 %v1040_v17  ;;  %v1003_v42 = vld [vmem:[#allocation5 + $0x10] sm:$0xf]  ;;  %v1342_v47 = vld [vmem:[#allocation8 + $0x60] sm:$0xff]  ;;  %v997_v53 = vld [vmem:[#allocation5 + $0x8] sm:$0xf0] }
  0x32   :  { %v1004_v48 = vor.u32 %v1317_v43, %v1003_v42  ;;  %v995_v50 = vld [vmem:[#allocation5] sm:$0xf]  ;;  %v1315_v51 = vld [vmem:[#allocation5 + $0x4] sm:$0xf0]  ;;  %v1314_v52 = vld [vmem:[#allocation5 + $0x4] sm:$0xf] }
  0x33   :  { %449 = vmatpush.bf16.msra.mxu2 %v1335_v38  ;;  %v996_v54 = vor.u32 %v1315_v51, %v995_v50  ;;  %v1000_v55 = vor.u32 %v1314_v52, %v997_v53  ;;  %v1333_v57 = vld [vmem:[#allocation8 + $0x18] sm:$0xff]  ;;  %v1332_v59 = vld [vmem:[#allocation8 + $0x10] sm:$0xff]  ;;  %v1331_v61 = vld [vmem:[#allocation8 + $0x8] sm:$0xff] }
  0x34   :  { %284 = vmatpush.bf16.msra.mxu0 %v1028_v22  ;;  %463 = vmatpush.bf16.msra.mxu3 %v1343_v39  ;;  %v1341_v58 = vld [vmem:[#allocation8 + $0x58] sm:$0xff]  ;;  %v1340_v60 = vld [vmem:[#allocation8 + $0x50] sm:$0xff]  ;;  %v1339_v62 = vld [vmem:[#allocation8 + $0x48] sm:$0xff] }
  0x35   :  { %298 = vmatpush.bf16.msra.mxu1 %v1032_v25  ;;  %v1330_v63 = vld [vmem:[#allocation8] sm:$0xff]  ;;  %v1353_v1 = vld [vmem:[#allocation10 + $0x38] sm:$0xff]  ;;  %v1352_v2 = vld [vmem:[#allocation10 + $0x30] sm:$0xff] }
  0x36   :  { %v1338_v0 = vld [vmem:[#allocation8 + $0x40] sm:$0xff]  ;;  %v1351_v3 = vld [vmem:[#allocation10 + $0x28] sm:$0xff]  ;;  %v189_v5 = vld [vmem:[#allocation7] sm:$0x3] }
  0x37   :  { %450 = vmatpush.bf16.msra.mxu2 %v1334_v46  ;;  %v1350_v4 = vld [vmem:[#allocation10 + $0x20] sm:$0xff]  ;;  %v191_v8 = vperm.slane %v189_v5, 0  ;;  %v192_v9 = vperm.slane %v189_v5, 1  ;;  %v1349_v22 = vld [vmem:[#allocation10 + $0x18] sm:$0xff]  ;;  %v1348_v23 = vld [vmem:[#allocation10 + $0x10] sm:$0xff] }
  0x38   :  { %285 = vmatpush.bf16.msra.mxu0 %v1020_v32  ;;  %464 = vmatpush.bf16.msra.mxu3 %v1342_v47  ;;  %v1347_v24 = vld [vmem:[#allocation10 + $0x8] sm:$0xff]  ;;  %v1346_v25 = vld [vmem:[#allocation10] sm:$0xff]  ;;  %v1361_v26 = vld [vmem:[#allocation11 + $0x38] sm:$0xff] }
  0x39   :  { %299 = vmatpush.bf16.msra.mxu1 %v1024_v33  ;;  %v1360_v27 = vld [vmem:[#allocation11 + $0x30] sm:$0xff]  ;;  %v1359_v28 = vld [vmem:[#allocation11 + $0x28] sm:$0xff]  ;;  %v1358_v29 = vld [vmem:[#allocation11 + $0x20] sm:$0xff] }
  0x3a   :  { %v1357_v30 = vld [vmem:[#allocation11 + $0x18] sm:$0xff]  ;;  %v1413_v32 = vld [vmem:[%s1836_s4] ss:$0 sm:$0xff]  ;;  %v1355_v44 = vld [vmem:[#allocation11 + $0x8] sm:$0xff] }
  0x3b   :  { %451 = vmatpush.bf16.msra.mxu2 %v1333_v57  ;;  %v1356_v43 = vld [vmem:[#allocation11 + $0x10] sm:$0xff]  ;;  %v1354_v45 = vld [vmem:[#allocation11] sm:$0xff]  ;;  %v1377_v47 = vld [vmem:[#allocation13 + $0x74] sm:$0xf0] }
  0x3c   :  { %286 = vmatpush.bf16.msra.mxu0 %v1012_v40  ;;  %465 = vmatpush.bf16.msra.mxu3 %v1341_v58  ;;  %v1243_v46 = vld [vmem:[#allocation13 + $0x70] sm:$0xf]  ;;  %v1245_v50 = vld [vmem:[#allocation13 + $0x78] sm:$0xf0]  ;;  %v1235_v51 = vld [vmem:[#allocation13 + $0x60] sm:$0xf] }
  0x3d   :  { %300 = vmatpush.bf16.msra.mxu1 %v1016_v41  ;;  %v1375_v52 = vld [vmem:[#allocation13 + $0x64] sm:$0xf0]  ;;  %v1227_v58 = vld [vmem:[#allocation13 + $0x50] sm:$0xf] }
  0x3f   :  { %452 = vmatpush.bf16.msra.mxu2 %v1332_v59  ;;  %v1373_v59 = vld [vmem:[#allocation13 + $0x54] sm:$0xf0] }
  0x40   :  { %287 = vmatpush.bf16.msra.mxu0 %v1004_v48  ;;  %466 = vmatpush.bf16.msra.mxu3 %v1340_v60  ;;  %v1376_v48 = vld [vmem:[#allocation13 + $0x74] sm:$0xf] }
  0x41   :  { %301 = vmatpush.bf16.msra.mxu1 %v1008_v49  ;;  %v1244_v49 = vor.u32 %v1377_v47, %v1243_v46  ;;  %v1248_v53 = vor.u32 %v1376_v48, %v1245_v50  ;;  %v1372_v60 = vld [vmem:[#allocation13 + $0x54] sm:$0xf] }
  0x43   :  { %453 = vmatpush.bf16.msra.mxu2 %v1331_v61  ;;  %v1229_v61 = vld [vmem:[#allocation13 + $0x58] sm:$0xf0] }
  0x44   :  { %288 = vmatpush.bf16.msra.mxu0 %v996_v54  ;;  %467 = vmatpush.bf16.msra.mxu3 %v1339_v62  ;;  %v1374_v54 = vld [vmem:[#allocation13 + $0x64] sm:$0xf]  ;;  %v1228_v62 = vor.u32 %v1373_v59, %v1227_v58 }
  0x45   :  { %302 = vmatpush.bf16.msra.mxu1 %v1000_v55  ;;  %v1237_v55 = vld [vmem:[#allocation13 + $0x68] sm:$0xf0]  ;;  %v1378_v58 = vld [vmem:[#allocation14] sm:$0xff] }
  0x46   :  { %v1240_v57 = vor.u32 %v1374_v54, %v1237_v55  ;;  %v1380_v54 = vld [vmem:[#allocation14 + $0x10] sm:$0xff]  ;;  %v1386_v59 = vld [vmem:[#allocation14 + $0x40] sm:$0xff] }
  0x47   :  { %289 = vmatmul.bf16.vlgmr.msra.gmra.mxu0 %v1313_v56  ;;  %454 = vmatpush.bf16.msra.mxu2 %v1330_v63  ;;  %v1232_v63 = vor.u32 %v1372_v60, %v1229_v61  ;;  %v1388_v55 = vld [vmem:[#allocation14 + $0x50] sm:$0xff] }
  0x48   :  { %303 = vmatmul.bf16.vlgmr.msra.gmra.mxu1 %v1313_v56  ;;  %468 = vmatpush.bf16.msra.mxu3 %v1338_v0  ;;  %v1236_v56 = vor.u32 %v1375_v52, %v1235_v51  ;;  %v1219_v0 = vld [vmem:[#allocation13 + $0x40] sm:$0xf]  ;;  %v1381_v52 = vld [vmem:[#allocation14 + $0x18] sm:$0xff]  ;;  %v664_v60 = vld [vmem:[%s1842_s10] sm:$0x3]  ;;  %s952_s10 = sshll.u32 %s1683_s24, 4  ;;  %s953_s10 = int_to_ptr.vmem [resolvable:$true] %s952_s10 }
  0x49   :  { %546 = vmatpush.bf16.msrb.mxu0 %v1353_v1  ;;  %631 = vmatpush.bf16.msrb.mxu1 %v1361_v26  ;;  %v1371_v1 = vld [vmem:[#allocation13 + $0x44] sm:$0xf0]  ;;  %v1364_v26 = vld [vmem:[#allocation13 + $0x14] sm:$0xf] }
  0x4b   :  { %750 = vmatpush.bf16.msrb.mxu2 %v1244_v49 }
  0x4c   :  { %764 = vmatpush.bf16.msrb.mxu3 %v1248_v53  ;;  %v1389_v53 = vld [vmem:[#allocation14 + $0x58] sm:$0xff] }
  0x4d   :  { %547 = vmatpush.bf16.msrb.mxu0 %v1352_v2  ;;  %632 = vmatpush.bf16.msrb.mxu1 %v1360_v27  ;;  %v1370_v2 = vld [vmem:[#allocation13 + $0x44] sm:$0xf] }
  0x4f   :  { %751 = vmatpush.bf16.msrb.mxu2 %v1236_v56  ;;  %v1379_v56 = vld [vmem:[#allocation14 + $0x8] sm:$0xff] }
  0x50   :  { %765 = vmatpush.bf16.msrb.mxu3 %v1240_v57  ;;  %v1387_v57 = vld [vmem:[#allocation14 + $0x48] sm:$0xff] }
  0x51   :  { %548 = vmatpush.bf16.msrb.mxu0 %v1351_v3  ;;  %633 = vmatpush.bf16.msrb.mxu1 %v1359_v28  ;;  %v1221_v3 = vld [vmem:[#allocation13 + $0x48] sm:$0xf0]  ;;  %v1197_v28 = vld [vmem:[#allocation13 + $0x18] sm:$0xf0] }
  0x52   :  { %v1224_v5 = vor.u32 %v1370_v2, %v1221_v3 }
  0x53   :  { %752 = vmatpush.bf16.msrb.mxu2 %v1228_v62 }
  0x54   :  { %766 = vmatpush.bf16.msrb.mxu3 %v1232_v63  ;;  %v666_v63 = vperm.slane %v664_v60, 0 }
  0x55   :  { %549 = vmatpush.bf16.msrb.mxu0 %v1350_v4  ;;  %634 = vmatpush.bf16.msrb.mxu1 %v1358_v29  ;;  %v1220_v4 = vor.u32 %v1371_v1, %v1219_v0  ;;  %v1200_v29 = vor.u32 %v1364_v26, %v1197_v28  ;;  %v667_v0 = vperm.slane %v664_v60, 1 }
  0x57   :  { %753 = vmatpush.bf16.msrb.mxu2 %v1220_v4 }
  0x58   :  { %767 = vmatpush.bf16.msrb.mxu3 %v1224_v5 }
  0x59   :  { %550 = vmatpush.bf16.msrb.mxu0 %v1349_v22  ;;  %635 = vmatpush.bf16.msrb.mxu1 %v1357_v30  ;;  %v1205_v22 = vld [vmem:[#allocation13 + $0x28] sm:$0xf0]  ;;  %v1187_v30 = vld [vmem:[#allocation13] sm:$0xf] }
  0x5d   :  { %551 = vmatpush.bf16.msrb.mxu0 %v1348_v23  ;;  %636 = vmatpush.bf16.msrb.mxu1 %v1356_v43  ;;  %v1390_v43 = vld [vmem:[#allocation14 + $0x60] sm:$0xff] }
  0x61   :  { %552 = vmatpush.bf16.msrb.mxu0 %v1347_v24  ;;  %637 = vmatpush.bf16.msrb.mxu1 %v1355_v44  ;;  %v1195_v24 = vld [vmem:[#allocation13 + $0x10] sm:$0xf] }
  0x65   :  { %553 = vmatpush.bf16.msrb.mxu0 %v1346_v25  ;;  %638 = vmatpush.bf16.msrb.mxu1 %v1354_v45  ;;  %v1365_v25 = vld [vmem:[#allocation13 + $0x14] sm:$0xf0]  ;;  %v1415_v45 = vld [vmem:[%s1840_s8] ss:$0 sm:$0xff] }
  0x66   :  { %v1196_v27 = vor.u32 %v1365_v25, %v1195_v24 }
  0xc4   :  { %v290_v6 = vpop.f32.mrf.mxu0 }
  0xc5   :  { %v304_v7 = vpop.f32.mrf.mxu1  ;;  %v291_v10 = vadd.f32 %v290_v6, %v191_v8  ;;  %v1414_v6 = vld [vmem:[%s1838_s6] ss:$0 sm:$0xff] }
  0xc6   :  { %v305_v11 = vadd.f32 %v304_v7, %v192_v9 }
  0xc7   :  { %v309_v16 = vmax.f32 %v291_v10, 0.0 }
  0xc8   :  { %v310_v18 = vmax.f32 %v305_v11, 0.0 }
  0xcc   :  { %v292_v12 = vpop.f32.mrf.mxu0 }
  0xcd   :  { %v293_v13 = vadd.f32 %v292_v12, %v191_v8  ;;  %v306_v14 = vpop.f32.mrf.mxu1  ;;  %v1211_v12 = vld [vmem:[#allocation13 + $0x30] sm:$0xf] }
  0xce   :  { %v307_v15 = vadd.f32 %v306_v14, %v192_v9  ;;  %v1368_v14 = vld [vmem:[#allocation13 + $0x34] sm:$0xf] }
  0xcf   :  { %v311_v17 = vmax.f32 %v293_v13, 0.0  ;;  %v1369_v13 = vld [vmem:[#allocation13 + $0x34] sm:$0xf0] }
  0xd0   :  { %v312_v19 = vmax.f32 %v307_v15, 0.0  ;;  %v1212_v15 = vor.u32 %v1369_v13, %v1211_v12 }
  0xd1   :  { %v313_v20 = vpack.c.bf16 %v311_v17, %v309_v16  ;;  %v1213_v16 = vld [vmem:[#allocation13 + $0x38] sm:$0xf0] }
  0xd2   :  { %v314_v21 = vpack.c.bf16 %v312_v19, %v310_v18  ;;  %v1216_v17 = vor.u32 %v1368_v14, %v1213_v16  ;;  %754 = vmatpush.bf16.msrb.mxu2 %v1212_v15  ;;  %v1203_v18 = vld [vmem:[#allocation13 + $0x20] sm:$0xf]  ;;  %v1367_v19 = vld [vmem:[#allocation13 + $0x24] sm:$0xf0]  ;;  %v1416_v15 = vld [vmem:[%s1844_s12] ss:$0 sm:$0xff] }
  0xd3   :  { %455 = vmatmul.bf16.vlgmr.msra.gmra.mxu2 %v313_v20  ;;  %v1366_v20 = vld [vmem:[#allocation13 + $0x24] sm:$0xf] }
  0xd4   :  { %469 = vmatmul.bf16.vlgmr.msra.gmra.mxu3 %v314_v21  ;;  %v1204_v21 = vor.u32 %v1367_v19, %v1203_v18  ;;  %v1208_v23 = vor.u32 %v1366_v20, %v1205_v22 }
  0xd5   :  { %768 = vmatpush.bf16.msrb.mxu3 %v1216_v17 }
  0xd6   :  { %755 = vmatpush.bf16.msrb.mxu2 %v1204_v21 }
  0xd9   :  { %769 = vmatpush.bf16.msrb.mxu3 %v1208_v23 }
  0xda   :  { %756 = vmatpush.bf16.msrb.mxu2 %v1196_v27 }
  0xdd   :  { %770 = vmatpush.bf16.msrb.mxu3 %v1200_v29 }
 0x156   :  { %v456_v31 = vpop.f32.mrf.mxu2 }
 0x157   :  { %v470_v33 = vpop.f32.mrf.mxu3  ;;  %v457_v34 = vadd.f32 %v1413_v32, %v456_v31  ;;  %v1363_v31 = vld [vmem:[#allocation13 + $0x4] sm:$0xf0] }
 0x159   :  { %v471_v36 = vadd.f32 %v470_v33, %v457_v34  ;;  %v1188_v33 = vor.u32 %v1363_v31, %v1187_v30  ;;  %v1189_v34 = vld [vmem:[#allocation13 + $0x8] sm:$0xf0] }
 0x15b   :  { %v475_v40 = vmax.f32 %v471_v36, 0.0  ;;  %757 = vmatpush.bf16.msrb.mxu2 %v1188_v33  ;;  %v1385_v36 = vld [vmem:[#allocation14 + $0x38] sm:$0xff] }
 0x15c   :  { %916 = vmatpush.bf16.msra.mxu0 %v1385_v36 }
 0x15e   :  { %v458_v35 = vpop.f32.mrf.mxu2 }
 0x15f   :  { %v459_v37 = vadd.f32 %v1413_v32, %v458_v35  ;;  %v472_v38 = vpop.f32.mrf.mxu3  ;;  %v1362_v32 = vld [vmem:[#allocation13 + $0x4] sm:$0xf] }
 0x160   :  { %v1192_v35 = vor.u32 %v1362_v32, %v1189_v34 }
 0x161   :  { %v473_v39 = vadd.f32 %v472_v38, %v459_v37  ;;  %v1393_v37 = vld [vmem:[#allocation14 + $0x78] sm:$0xff]  ;;  %v1384_v38 = vld [vmem:[#allocation14 + $0x30] sm:$0xff] }
 0x162   :  { %771 = vmatpush.bf16.msrb.mxu3 %v1192_v35  ;;  %930 = vmatpush.bf16.msra.mxu1 %v1393_v37 }
 0x163   :  { %v476_v41 = vmax.f32 %v473_v39, 0.0  ;;  %v1392_v39 = vld [vmem:[#allocation14 + $0x70] sm:$0xff]  ;;  %917 = vmatpush.bf16.msra.mxu0 %v1384_v38 }
 0x165   :  { %v477_v42 = vpack.c.bf16 %v476_v41, %v475_v40  ;;  %v1383_v40 = vld [vmem:[#allocation14 + $0x28] sm:$0xff] }
 0x166   :  { %931 = vmatpush.bf16.msra.mxu1 %v1392_v39  ;;  %v1391_v41 = vld [vmem:[#allocation14 + $0x68] sm:$0xff] }
 0x167   :  { %554 = vmatmul.bf16.vlgmr.msrb.gmra.mxu0 %v477_v42  ;;  %v1382_v42 = vld [vmem:[#allocation14 + $0x20] sm:$0xff] }
 0x168   :  { %918 = vmatpush.bf16.msra.mxu0 %v1383_v40 }
 0x16a   :  { %932 = vmatpush.bf16.msra.mxu1 %v1391_v41 }
 0x16c   :  { %919 = vmatpush.bf16.msra.mxu0 %v1382_v42 }
 0x16e   :  { %933 = vmatpush.bf16.msra.mxu1 %v1390_v43 }
 0x170   :  { %920 = vmatpush.bf16.msra.mxu0 %v1381_v52 }
 0x172   :  { %934 = vmatpush.bf16.msra.mxu1 %v1389_v53 }
 0x174   :  { %921 = vmatpush.bf16.msra.mxu0 %v1380_v54 }
 0x176   :  { %935 = vmatpush.bf16.msra.mxu1 %v1388_v55 }
 0x178   :  { %922 = vmatpush.bf16.msra.mxu0 %v1379_v56 }
 0x17a   :  { %936 = vmatpush.bf16.msra.mxu1 %v1387_v57 }
 0x17c   :  { %923 = vmatpush.bf16.msra.mxu0 %v1378_v58 }
 0x17e   :  { %937 = vmatpush.bf16.msra.mxu1 %v1386_v59 }
 0x1e4   :  { %v555_v7 = vpop.f32.mrf.mxu0 }
 0x1e5   :  { %v556_v8 = vadd.f32 %v1414_v6, %v555_v7 }
 0x1e7   :  { %560 = vst [vmem:[#allocation16] sm:$0xff] %v556_v8 }
 0x1ec   :  { %v557_v9 = vpop.f32.mrf.mxu0 }
 0x1ed   :  { %v558_v10 = vadd.f32 %v1414_v6, %v557_v9 }
 0x1ef   :  { %561 = vst [vmem:[#allocation16 + $0x8] sm:$0xff] %v558_v10  ;;  %v562_v11 = vpack.c.bf16 %v558_v10, %v556_v8 }
 0x1f0   :  { %960 = dma.vmem_to_hbm [thread:$0]  %s953_s10, 256, %s955_s26, [#allocation4], %s1672_s18, %s1672_s18, %s1673_s19  }
 0x1f1   :  { %639 = vmatmul.bf16.vlgmr.msrb.gmra.mxu1 %v562_v11 }
 0x26e   :  { %v640_v44 = vpop.f32.mrf.mxu1 }
 0x26f   :  { %v641_v46 = vadd.f32 %v1415_v45, %v640_v44 }
 0x271   :  { %v645_v49 = vmax.f32 %v641_v46, 0.0 }
 0x276   :  { %v642_v47 = vpop.f32.mrf.mxu1 }
 0x277   :  { %v643_v48 = vadd.f32 %v1415_v45, %v642_v47 }
 0x279   :  { %v646_v50 = vmax.f32 %v643_v48, 0.0 }
 0x27b   :  { %v647_v51 = vpack.c.bf16 %v646_v50, %v645_v49 }
 0x27d   :  { %758 = vmatmul.bf16.vlgmr.msrb.gmra.mxu2 %v647_v51  ;;  %772 = vmatmul.bf16.vlgmr.msrb.gmra.mxu3 %v647_v51 }
 0x300   :  { %v759_v61 = vpop.f32.mrf.mxu2  ;;  %v773_v62 = vpop.f32.mrf.mxu3 }
 0x301   :  { %v760_v1 = vadd.f32 %v759_v61, %v666_v63  ;;  %v774_v2 = vadd.f32 %v773_v62, %v667_v0 }
 0x303   :  { %v778_v7 = vmax.f32 %v760_v1, 0.0  ;;  %v779_v8 = vmax.f32 %v774_v2, 0.0 }
 0x308   :  { %v761_v3 = vpop.f32.mrf.mxu2  ;;  %v775_v4 = vpop.f32.mrf.mxu3 }
 0x309   :  { %v762_v5 = vadd.f32 %v761_v3, %v666_v63  ;;  %v776_v6 = vadd.f32 %v775_v4, %v667_v0 }
 0x30b   :  { %v780_v9 = vmax.f32 %v762_v5, 0.0  ;;  %v781_v10 = vmax.f32 %v776_v6, 0.0 }
 0x30d   :  { %v782_v11 = vpack.c.bf16 %v780_v9, %v778_v7  ;;  %v783_v12 = vpack.c.bf16 %v781_v10, %v779_v8 }
 0x30f   :  { %924 = vmatmul.bf16.vlgmr.msra.gmra.mxu0 %v782_v11  ;;  %938 = vmatmul.bf16.vlgmr.msra.gmra.mxu1 %v783_v12 }
 0x38c   :  { %v925_v13 = vpop.f32.mrf.mxu0  ;;  %v939_v14 = vpop.f32.mrf.mxu1 }
 0x38d   :  { %v926_v16 = vadd.f32 %v1416_v15, %v925_v13 }
 0x38f   :  { %v940_v20 = vadd.f32 %v939_v14, %v926_v16 }
 0x394   :  { %v927_v17 = vpop.f32.mrf.mxu0  ;;  %v941_v19 = vpop.f32.mrf.mxu1 }
 0x395   :  { %v928_v18 = vadd.f32 %v1416_v15, %v927_v17 }
 0x397   :  { %v942_v21 = vadd.f32 %v941_v19, %v928_v18 }
 0x399   :  { %v1397_v22 = vpack.c.bf16 %v942_v21, %v940_v20 }
 0x39b   :  { %1398 = vst [vmem:[#allocation17] sm:$0xff] %v1397_v22  }
 0x39c   :  { %973 = dma.vmem_to_hbm [thread:$0]  %s966_s2, 128, %s968_s16, [#allocation18], %s1675_s27, %s1675_s27, %s1676_s28  }
 0x39d   :  { %1667 = dma.done.wait [#allocation4], 256  }
 0x39e   :  { %1668 = vsyncadd [#allocation4], 4294967040 }
 0x39f   :  { %1669 = dma.done.wait [#allocation18], 128  }
 0x3a0   :  { %1670 = vsyncadd [#allocation18], 4294967168 }
 0x3a1   :  { %982 = vsyncpa [#allocation3], 1 }
 0x3a2   :  { %983 = vsyncpa [#allocation6], 1 }
 0x3a3   :  { %984 = vsyncpa [#allocation9], 1 }
 0x3a4   :  { %985 = vsyncpa [#allocation12], 1 }
 0x3a5   :  { %986 = vsyncpa [#allocation15], 1 }
 0x3a6   :  { %987 = vsyncpa [#allocation4], 1 }
 0x3a7   :  { %988 = vsyncpa [#allocation18], 1 }

// kernel: tpu_custom_call.1
= control target key start
LH: loop header
LB: loop body
LE: loop exit
PB: predicated region body
PF: predicated region fallthrough
CT: control target
= control target key end

     0   :  { %20 = vsyncpa [#allocation3], 0  ;;  %s1832_s0 = inlined_call_operand.hbm [shape: bf16[16,128], index: 0, kind: input, shape index: {}]   ;;  %s1833_s1 = inlined_call_operand.hbm [shape: bf16[128,256], index: 1, kind: input, shape index: {}]   ;;  %s1834_s2 = inlined_call_operand.hbm [shape: f32[1,256], index: 2, kind: input, shape index: {}]   ;;  %s1835_s3 = inlined_call_operand.hbm [shape: bf16[256,128], index: 3, kind: input, shape index: {}]   ;;  %s1836_s4 = inlined_call_operand.vmem [shape: f32[1,128], index: 4, kind: input, shape index: {}]   ;;  %s1837_s5 = inlined_call_operand.hbm [shape: bf16[128,128], index: 5, kind: input, shape index: {}]   ;;  %s1838_s6 = inlined_call_operand.vmem [shape: f32[1,128], index: 6, kind: input, shape index: {}]   ;;  %s1839_s7 = inlined_call_operand.hbm [shape: bf16[128,128], index: 7, kind: input, shape index: {}]   ;;  %s1840_s8 = inlined_call_operand.vmem [shape: f32[1,128], index: 8, kind: input, shape index: {}]   ;;  %s1841_s9 = inlined_call_operand.hbm [shape: bf16[128,256], index: 9, kind: input, shape index: {}]   ;;  %s1842_s10 = inlined_call_operand.vmem [shape: f32[1,256], index: 10, kind: input, shape index: {}]   ;;  %s1843_s11 = inlined_call_operand.hbm [shape: bf16[256,128], index: 11, kind: input, shape index: {}]   ;;  %s1844_s12 = inlined_call_operand.vmem [shape: f32[1,128], index: 12, kind: input, shape index: {}]   ;;  %s1845_s13 = inlined_call_operand.hbm [shape: f32[16,128], index: 13, kind: output, shape index: {0}]   ;;  %s1846_s14 = inlined_call_operand.hbm [shape: bf16[16,128], index: 14, kind: output, shape index: {1}]  }
   0x1   :  { %21 = vsyncpa [#allocation6], 0 }
   0x2   :  { %22 = vsyncpa [#allocation9], 0 }
   0x3   :  { %23 = vsyncpa [#allocation12], 0 }
   0x4   :  { %24 = vsyncpa [#allocation15], 0 }
   0x5   :  { %25 = vsyncpa [#allocation4], 0  ;;  %s44_s15 = sshll.u32 %s1833_s1, 4  ;;  %s45_s15 = int_to_ptr.hbm [resolvable:$true] %s44_s15 }
   0x6   :  { %26 = vsyncpa [#allocation18], 0  ;;  %s1671_s16 = smov [#allocation5]   ;;  %s1672_s18 = smov 128  }
   0x7   :  { %s46_s17 = sshll.u32 %s1671_s16, 4  ;;  %s1673_s19 = smov 8   ;;  %s47_s17 = int_to_ptr.vmem [resolvable:$true] %s46_s17 }
   0x8   :  { %52 = dma.hbm_to_vmem [thread:$0]  %s45_s15, 2048, %s47_s17, [#allocation6], %s1672_s18, %s1672_s18, %s1673_s19  }
   0x9   :  { %s68_s22 = sshll.u32 %s1835_s3, 4  ;;  %s1674_s23 = smov [#allocation8]   ;;  %s69_s22 = int_to_ptr.hbm [resolvable:$true] %s68_s22 }
   0xa   :  { %s70_s24 = sshll.u32 %s1674_s23, 4  ;;  %s98_s26 = sshll.u32 %s1839_s7, 4  ;;  %s71_s24 = int_to_ptr.vmem [resolvable:$true] %s70_s24  ;;  %s99_s26 = int_to_ptr.hbm [resolvable:$true] %s98_s26 }
   0xb   :  { %s1675_s27 = smov 64   ;;  %s1676_s28 = smov 4  }
   0xc   :  { %76 = dma.hbm_to_vmem [thread:$0]  %s69_s22, 2048, %s71_s24, [#allocation9], %s1675_s27, %s1675_s27, %s1676_s28  }
   0xd   :  { %s31_s15 = sshll.u32 %s1832_s0, 4  ;;  %s1677_s3 = smov [#allocation11]   ;;  %s32_s15 = int_to_ptr.hbm [resolvable:$true] %s31_s15 }
   0xe   :  { %s100_s16 = sshll.u32 %s1677_s3, 4  ;;  %s1678_s7 = smov [#allocation2]   ;;  %s101_s16 = int_to_ptr.vmem [resolvable:$true] %s100_s16 }
   0xf   :  { %106 = dma.hbm_to_vmem [thread:$0]  %s99_s26, 1024, %s101_s16, [#allocation12], %s1675_s27, %s1675_s27, %s1676_s28  }
  0x10   :  { %s33_s17 = sshll.u32 %s1678_s7, 4  ;;  %s58_s23 = sshll.u32 %s1834_s2, 4  ;;  %s34_s17 = int_to_ptr.vmem [resolvable:$true] %s33_s17  ;;  %s59_s23 = int_to_ptr.hbm [resolvable:$true] %s58_s23 }
  0x11   :  { %39 = dma.hbm_to_vmem [thread:$0]  %s32_s15, 128, %s34_s17, [#allocation3], %s1675_s27, %s1675_s27, %s1676_s28  }
  0x12   :  { %s83_s24 = sshll.u32 %s1837_s5, 4  ;;  %s1679_s25 = smov [#allocation7]   ;;  %s84_s24 = int_to_ptr.hbm [resolvable:$true] %s83_s24 }
  0x13   :  { %s60_s1 = sshll.u32 %s1679_s25, 4  ;;  %s1680_s26 = smov [#allocation10]   ;;  %s61_s1 = int_to_ptr.vmem [resolvable:$true] %s60_s1 }
  0x14   :  { %63 = dma.hbm_to_vmem [thread:$0]  %s59_s23, 32, %s61_s1, [#allocation6]  }
  0x15   :  { %s85_s29 = sshll.u32 %s1680_s26, 4  ;;  %s113_s2 = sshll.u32 %s1841_s9, 4  ;;  %s86_s29 = int_to_ptr.vmem [resolvable:$true] %s85_s29  ;;  %s114_s2 = int_to_ptr.hbm [resolvable:$true] %s113_s2 }
  0x16   :  { %91 = dma.hbm_to_vmem [thread:$0]  %s84_s24, 1024, %s86_s29, [#allocation9], %s1675_s27, %s1675_s27, %s1676_s28  }
  0x17   :  { %s128_s5 = sshll.u32 %s1843_s11, 4  ;;  %s1681_s7 = smov [#allocation13]   ;;  %s129_s5 = int_to_ptr.hbm [resolvable:$true] %s128_s5 }
  0x18   :  { %s115_s17 = sshll.u32 %s1681_s7, 4  ;;  %s1682_s20 = smov [#allocation14]   ;;  %s116_s17 = int_to_ptr.vmem [resolvable:$true] %s115_s17 }
  0x19   :  { %121 = dma.hbm_to_vmem [thread:$0]  %s114_s2, 2048, %s116_s17, [#allocation12], %s1672_s18, %s1672_s18, %s1673_s19  }
  0x1a   :  { %s130_s9 = sshll.u32 %s1682_s20, 4  ;;  %s131_s9 = int_to_ptr.vmem [resolvable:$true] %s130_s9 }
  0x1b   :  { %136 = dma.hbm_to_vmem [thread:$0]  %s129_s5, 2048, %s131_s9, [#allocation15], %s1675_s27, %s1675_s27, %s1676_s28  }
  0x1c   :  { %1657 = dma.done.wait [#allocation3], 128  }
  0x1d   :  { %1658 = vsyncadd [#allocation3], 4294967168 }
  0x1e   :  { %1659 = dma.done.wait [#allocation6], 2080  }
  0x1f   :  { %1660 = vsyncadd [#allocation6], 4294965216 }
  0x20   :  { %1661 = dma.done.wait [#allocation9], 3072  }
  0x21   :  { %1662 = vsyncadd [#allocation9], 4294964224 }
  0x22   :  { %1663 = dma.done.wait [#allocation12], 3072  }
  0x23   :  { %1664 = vsyncadd [#allocation12], 4294964224 }
  0x24   :  { %1665 = dma.done.wait [#allocation15], 2048  }
  0x25   :  { %1666 = vsyncadd [#allocation15], 4294965248  ;;  %v1051_v0 = vld [vmem:[#allocation5 + $0x70] sm:$0xf]  ;;  %v1329_v1 = vld [vmem:[#allocation5 + $0x74] sm:$0xf0] }
  0x26   :  { %v1328_v2 = vld [vmem:[#allocation5 + $0x74] sm:$0xf]  ;;  %v1052_v3 = vor.u32 %v1329_v1, %v1051_v0  ;;  %v1053_v4 = vld [vmem:[#allocation5 + $0x78] sm:$0xf0]  ;;  %v1043_v5 = vld [vmem:[#allocation5 + $0x60] sm:$0xf] }
  0x27   :  { %v1327_v6 = vld [vmem:[#allocation5 + $0x64] sm:$0xf0]  ;;  %v1056_v7 = vor.u32 %v1328_v2, %v1053_v4  ;;  %v1326_v8 = vld [vmem:[#allocation5 + $0x64] sm:$0xf]  ;;  %v1045_v9 = vld [vmem:[#allocation5 + $0x68] sm:$0xf0] }
  0x28   :  { %281 = vmatpush.bf16.msra.mxu0 %v1052_v3  ;;  %v1044_v10 = vor.u32 %v1327_v6, %v1043_v5  ;;  %v1048_v11 = vor.u32 %v1326_v8, %v1045_v9  ;;  %v1035_v12 = vld [vmem:[#allocation5 + $0x50] sm:$0xf]  ;;  %v1325_v13 = vld [vmem:[#allocation5 + $0x54] sm:$0xf0]  ;;  %v1324_v14 = vld [vmem:[#allocation5 + $0x54] sm:$0xf] }
  0x29   :  { %295 = vmatpush.bf16.msra.mxu1 %v1056_v7  ;;  %v1037_v15 = vld [vmem:[#allocation5 + $0x58] sm:$0xf0]  ;;  %v1036_v16 = vor.u32 %v1325_v13, %v1035_v12  ;;  %v1027_v18 = vld [vmem:[#allocation5 + $0x40] sm:$0xf]  ;;  %v1323_v19 = vld [vmem:[#allocation5 + $0x44] sm:$0xf0] }
  0x2a   :  { %v1040_v17 = vor.u32 %v1324_v14, %v1037_v15  ;;  %v1322_v20 = vld [vmem:[#allocation5 + $0x44] sm:$0xf]  ;;  %v1029_v21 = vld [vmem:[#allocation5 + $0x48] sm:$0xf0]  ;;  %v1028_v22 = vor.u32 %v1323_v19, %v1027_v18  ;;  %v1337_v23 = vld [vmem:[#allocation8 + $0x38] sm:$0xff]  ;;  %s1683_s24 = smov [#allocation16]  }
  0x2b   :  { %v1345_v24 = vld [vmem:[#allocation8 + $0x78] sm:$0xff]  ;;  %v1032_v25 = vor.u32 %v1322_v20, %v1029_v21  ;;  %v1019_v26 = vld [vmem:[#allocation5 + $0x30] sm:$0xf]  ;;  %v1320_v28 = vld [vmem:[#allocation5 + $0x34] sm:$0xf]  ;;  %447 = vmatpush.bf16.msra.mxu2 %v1337_v23  ;;  %s954_s26 = sshll.u32 %s1845_s13, 4  ;;  %s955_s26 = int_to_ptr.hbm [resolvable:$true] %s954_s26 }
  0x2c   :  { %282 = vmatpush.bf16.msra.mxu0 %v1044_v10  ;;  %v1321_v27 = vld [vmem:[#allocation5 + $0x34] sm:$0xf0]  ;;  %v1021_v29 = vld [vmem:[#allocation5 + $0x38] sm:$0xf0]  ;;  %461 = vmatpush.bf16.msra.mxu3 %v1345_v24  ;;  %v1011_v34 = vld [vmem:[#allocation5 + $0x20] sm:$0xf] }
  0x2d   :  { %296 = vmatpush.bf16.msra.mxu1 %v1048_v11  ;;  %v1336_v30 = vld [vmem:[#allocation8 + $0x30] sm:$0xff]  ;;  %v1020_v32 = vor.u32 %v1321_v27, %v1019_v26  ;;  %v1024_v33 = vor.u32 %v1320_v28, %v1021_v29  ;;  %v1319_v35 = vld [vmem:[#allocation5 + $0x24] sm:$0xf0]  ;;  %v1318_v36 = vld [vmem:[#allocation5 + $0x24] sm:$0xf]  ;;  %s1684_s3 = smov [#allocation17]  }
  0x2e   :  { %v1344_v31 = vld [vmem:[#allocation8 + $0x70] sm:$0xff]  ;;  %v1013_v37 = vld [vmem:[#allocation5 + $0x28] sm:$0xf0]  ;;  %v1012_v40 = vor.u32 %v1319_v35, %v1011_v34  ;;  %v1005_v45 = vld [vmem:[#allocation5 + $0x18] sm:$0xf0]  ;;  %s965_s2 = sshll.u32 %s1684_s3, 4  ;;  %s966_s2 = int_to_ptr.vmem [resolvable:$true] %s965_s2 }
  0x2f   :  { %448 = vmatpush.bf16.msra.mxu2 %v1336_v30  ;;  %v1335_v38 = vld [vmem:[#allocation8 + $0x28] sm:$0xff]  ;;  %v1016_v41 = vor.u32 %v1318_v36, %v1013_v37  ;;  %v1317_v43 = vld [vmem:[#allocation5 + $0x14] sm:$0xf0]  ;;  %v1316_v44 = vld [vmem:[#allocation5 + $0x14] sm:$0xf]  ;;  %s967_s16 = sshll.u32 %s1846_s14, 4  ;;  %s968_s16 = int_to_ptr.hbm [resolvable:$true] %s967_s16 }
  0x30   :  { %283 = vmatpush.bf16.msra.mxu0 %v1036_v16  ;;  %462 = vmatpush.bf16.msra.mxu3 %v1344_v31  ;;  %v1343_v39 = vld [vmem:[#allocation8 + $0x68] sm:$0xff]  ;;  %v1334_v46 = vld [vmem:[#allocation8 + $0x20] sm:$0xff]  ;;  %v1008_v49 = vor.u32 %v1316_v44, %v1005_v45  ;;  %v1313_v56 = vld [vmem:[#allocation2] sm:$0xff] }
  0x31   :  { %297 = vmatpush.bf16.msra.mxu1 %v1040_v17  ;;  %v1003_v42 = vld [vmem:[#allocation5 + $0x10] sm:$0xf]  ;;  %v1342_v47 = vld [vmem:[#allocation8 + $0x60] sm:$0xff]  ;;  %v997_v53 = vld [vmem:[#allocation5 + $0x8] sm:$0xf0] }
  0x32   :  { %v1004_v48 = vor.u32 %v1317_v43, %v1003_v42  ;;  %v995_v50 = vld [vmem:[#allocation5] sm:$0xf]  ;;  %v1315_v51 = vld [vmem:[#allocation5 + $0x4] sm:$0xf0]  ;;  %v1314_v52 = vld [vmem:[#allocation5 + $0x4] sm:$0xf] }
  0x33   :  { %449 = vmatpush.bf16.msra.mxu2 %v1335_v38  ;;  %v996_v54 = vor.u32 %v1315_v51, %v995_v50  ;;  %v1000_v55 = vor.u32 %v1314_v52, %v997_v53  ;;  %v1333_v57 = vld [vmem:[#allocation8 + $0x18] sm:$0xff]  ;;  %v1332_v59 = vld [vmem:[#allocation8 + $0x10] sm:$0xff]  ;;  %v1331_v61 = vld [vmem:[#allocation8 + $0x8] sm:$0xff] }
  0x34   :  { %284 = vmatpush.bf16.msra.mxu0 %v1028_v22  ;;  %463 = vmatpush.bf16.msra.mxu3 %v1343_v39  ;;  %v1341_v58 = vld [vmem:[#allocation8 + $0x58] sm:$0xff]  ;;  %v1340_v60 = vld [vmem:[#allocation8 + $0x50] sm:$0xff]  ;;  %v1339_v62 = vld [vmem:[#allocation8 + $0x48] sm:$0xff] }
  0x35   :  { %298 = vmatpush.bf16.msra.mxu1 %v1032_v25  ;;  %v1330_v63 = vld [vmem:[#allocation8] sm:$0xff]  ;;  %v1353_v1 = vld [vmem:[#allocation10 + $0x38] sm:$0xff]  ;;  %v1352_v2 = vld [vmem:[#allocation10 + $0x30] sm:$0xff] }
  0x36   :  { %v1338_v0 = vld [vmem:[#allocation8 + $0x40] sm:$0xff]  ;;  %v1351_v3 = vld [vmem:[#allocation10 + $0x28] sm:$0xff]  ;;  %v189_v5 = vld [vmem:[#allocation7] sm:$0x3] }
  0x37   :  { %450 = vmatpush.bf16.msra.mxu2 %v1334_v46  ;;  %v1350_v4 = vld [vmem:[#allocation10 + $0x20] sm:$0xff]  ;;  %v191_v8 = vperm.slane %v189_v5, 0  ;;  %v192_v9 = vperm.slane %v189_v5, 1  ;;  %v1349_v22 = vld [vmem:[#allocation10 + $0x18] sm:$0xff]  ;;  %v1348_v23 = vld [vmem:[#allocation10 + $0x10] sm:$0xff] }
  0x38   :  { %285 = vmatpush.bf16.msra.mxu0 %v1020_v32  ;;  %464 = vmatpush.bf16.msra.mxu3 %v1342_v47  ;;  %v1347_v24 = vld [vmem:[#allocation10 + $0x8] sm:$0xff]  ;;  %v1346_v25 = vld [vmem:[#allocation10] sm:$0xff]  ;;  %v1361_v26 = vld [vmem:[#allocation11 + $0x38] sm:$0xff] }
  0x39   :  { %299 = vmatpush.bf16.msra.mxu1 %v1024_v33  ;;  %v1360_v27 = vld [vmem:[#allocation11 + $0x30] sm:$0xff]  ;;  %v1359_v28 = vld [vmem:[#allocation11 + $0x28] sm:$0xff]  ;;  %v1358_v29 = vld [vmem:[#allocation11 + $0x20] sm:$0xff] }
  0x3a   :  { %v1357_v30 = vld [vmem:[#allocation11 + $0x18] sm:$0xff]  ;;  %v1413_v32 = vld [vmem:[%s1836_s4] ss:$0 sm:$0xff]  ;;  %v1355_v44 = vld [vmem:[#allocation11 + $0x8] sm:$0xff] }
  0x3b   :  { %451 = vmatpush.bf16.msra.mxu2 %v1333_v57  ;;  %v1356_v43 = vld [vmem:[#allocation11 + $0x10] sm:$0xff]  ;;  %v1354_v45 = vld [vmem:[#allocation11] sm:$0xff]  ;;  %v1377_v47 = vld [vmem:[#allocation13 + $0x74] sm:$0xf0] }
  0x3c   :  { %286 = vmatpush.bf16.msra.mxu0 %v1012_v40  ;;  %465 = vmatpush.bf16.msra.mxu3 %v1341_v58  ;;  %v1243_v46 = vld [vmem:[#allocation13 + $0x70] sm:$0xf]  ;;  %v1245_v50 = vld [vmem:[#allocation13 + $0x78] sm:$0xf0]  ;;  %v1235_v51 = vld [vmem:[#allocation13 + $0x60] sm:$0xf] }
  0x3d   :  { %300 = vmatpush.bf16.msra.mxu1 %v1016_v41  ;;  %v1375_v52 = vld [vmem:[#allocation13 + $0x64] sm:$0xf0]  ;;  %v1227_v58 = vld [vmem:[#allocation13 + $0x50] sm:$0xf] }
  0x3f   :  { %452 = vmatpush.bf16.msra.mxu2 %v1332_v59  ;;  %v1373_v59 = vld [vmem:[#allocation13 + $0x54] sm:$0xf0] }
  0x40   :  { %287 = vmatpush.bf16.msra.mxu0 %v1004_v48  ;;  %466 = vmatpush.bf16.msra.mxu3 %v1340_v60  ;;  %v1376_v48 = vld [vmem:[#allocation13 + $0x74] sm:$0xf] }
  0x41   :  { %301 = vmatpush.bf16.msra.mxu1 %v1008_v49  ;;  %v1244_v49 = vor.u32 %v1377_v47, %v1243_v46  ;;  %v1248_v53 = vor.u32 %v1376_v48, %v1245_v50  ;;  %v1372_v60 = vld [vmem:[#allocation13 + $0x54] sm:$0xf] }
  0x43   :  { %453 = vmatpush.bf16.msra.mxu2 %v1331_v61  ;;  %v1229_v61 = vld [vmem:[#allocation13 + $0x58] sm:$0xf0] }
  0x44   :  { %288 = vmatpush.bf16.msra.mxu0 %v996_v54  ;;  %467 = vmatpush.bf16.msra.mxu3 %v1339_v62  ;;  %v1374_v54 = vld [vmem:[#allocation13 + $0x64] sm:$0xf]  ;;  %v1228_v62 = vor.u32 %v1373_v59, %v1227_v58 }
  0x45   :  { %302 = vmatpush.bf16.msra.mxu1 %v1000_v55  ;;  %v1237_v55 = vld [vmem:[#allocation13 + $0x68] sm:$0xf0]  ;;  %v1378_v58 = vld [vmem:[#allocation14] sm:$0xff] }
  0x46   :  { %v1240_v57 = vor.u32 %v1374_v54, %v1237_v55  ;;  %v1380_v54 = vld [vmem:[#allocation14 + $0x10] sm:$0xff]  ;;  %v1386_v59 = vld [vmem:[#allocation14 + $0x40] sm:$0xff] }
  0x47   :  { %289 = vmatmul.bf16.vlgmr.msra.gmra.mxu0 %v1313_v56  ;;  %454 = vmatpush.bf16.msra.mxu2 %v1330_v63  ;;  %v1232_v63 = vor.u32 %v1372_v60, %v1229_v61  ;;  %v1388_v55 = vld [vmem:[#allocation14 + $0x50] sm:$0xff] }
  0x48   :  { %303 = vmatmul.bf16.vlgmr.msra.gmra.mxu1 %v1313_v56  ;;  %468 = vmatpush.bf16.msra.mxu3 %v1338_v0  ;;  %v1236_v56 = vor.u32 %v1375_v52, %v1235_v51  ;;  %v1219_v0 = vld [vmem:[#allocation13 + $0x40] sm:$0xf]  ;;  %v1381_v52 = vld [vmem:[#allocation14 + $0x18] sm:$0xff]  ;;  %v664_v60 = vld [vmem:[%s1842_s10] sm:$0x3]  ;;  %s952_s10 = sshll.u32 %s1683_s24, 4  ;;  %s953_s10 = int_to_ptr.vmem [resolvable:$true] %s952_s10 }
  0x49   :  { %546 = vmatpush.bf16.msrb.mxu0 %v1353_v1  ;;  %631 = vmatpush.bf16.msrb.mxu1 %v1361_v26  ;;  %v1371_v1 = vld [vmem:[#allocation13 + $0x44] sm:$0xf0]  ;;  %v1364_v26 = vld [vmem:[#allocation13 + $0x14] sm:$0xf] }
  0x4b   :  { %750 = vmatpush.bf16.msrb.mxu2 %v1244_v49 }
  0x4c   :  { %764 = vmatpush.bf16.msrb.mxu3 %v1248_v53  ;;  %v1389_v53 = vld [vmem:[#allocation14 + $0x58] sm:$0xff] }
  0x4d   :  { %547 = vmatpush.bf16.msrb.mxu0 %v1352_v2  ;;  %632 = vmatpush.bf16.msrb.mxu1 %v1360_v27  ;;  %v1370_v2 = vld [vmem:[#allocation13 + $0x44] sm:$0xf] }
  0x4f   :  { %751 = vmatpush.bf16.msrb.mxu2 %v1236_v56  ;;  %v1379_v56 = vld [vmem:[#allocation14 + $0x8] sm:$0xff] }
  0x50   :  { %765 = vmatpush.bf16.msrb.mxu3 %v1240_v57  ;;  %v1387_v57 = vld [vmem:[#allocation14 + $0x48] sm:$0xff] }
  0x51   :  { %548 = vmatpush.bf16.msrb.mxu0 %v1351_v3  ;;  %633 = vmatpush.bf16.msrb.mxu1 %v1359_v28  ;;  %v1221_v3 = vld [vmem:[#allocation13 + $0x48] sm:$0xf0]  ;;  %v1197_v28 = vld [vmem:[#allocation13 + $0x18] sm:$0xf0] }
  0x52   :  { %v1224_v5 = vor.u32 %v1370_v2, %v1221_v3 }
  0x53   :  { %752 = vmatpush.bf16.msrb.mxu2 %v1228_v62 }
  0x54   :  { %766 = vmatpush.bf16.msrb.mxu3 %v1232_v63  ;;  %v666_v63 = vperm.slane %v664_v60, 0 }
  0x55   :  { %549 = vmatpush.bf16.msrb.mxu0 %v1350_v4  ;;  %634 = vmatpush.bf16.msrb.mxu1 %v1358_v29  ;;  %v1220_v4 = vor.u32 %v1371_v1, %v1219_v0  ;;  %v1200_v29 = vor.u32 %v1364_v26, %v1197_v28  ;;  %v667_v0 = vperm.slane %v664_v60, 1 }
  0x57   :  { %753 = vmatpush.bf16.msrb.mxu2 %v1220_v4 }
  0x58   :  { %767 = vmatpush.bf16.msrb.mxu3 %v1224_v5 }
  0x59   :  { %550 = vmatpush.bf16.msrb.mxu0 %v1349_v22  ;;  %635 = vmatpush.bf16.msrb.mxu1 %v1357_v30  ;;  %v1205_v22 = vld [vmem:[#allocation13 + $0x28] sm:$0xf0]  ;;  %v1187_v30 = vld [vmem:[#allocation13] sm:$0xf] }
  0x5d   :  { %551 = vmatpush.bf16.msrb.mxu0 %v1348_v23  ;;  %636 = vmatpush.bf16.msrb.mxu1 %v1356_v43  ;;  %v1390_v43 = vld [vmem:[#allocation14 + $0x60] sm:$0xff] }
  0x61   :  { %552 = vmatpush.bf16.msrb.mxu0 %v1347_v24  ;;  %637 = vmatpush.bf16.msrb.mxu1 %v1355_v44  ;;  %v1195_v24 = vld [vmem:[#allocation13 + $0x10] sm:$0xf] }
  0x65   :  { %553 = vmatpush.bf16.msrb.mxu0 %v1346_v25  ;;  %638 = vmatpush.bf16.msrb.mxu1 %v1354_v45  ;;  %v1365_v25 = vld [vmem:[#allocation13 + $0x14] sm:$0xf0]  ;;  %v1415_v45 = vld [vmem:[%s1840_s8] ss:$0 sm:$0xff] }
  0x66   :  { %v1196_v27 = vor.u32 %v1365_v25, %v1195_v24 }
  0xc4   :  { %v290_v6 = vpop.f32.mrf.mxu0 }
  0xc5   :  { %v304_v7 = vpop.f32.mrf.mxu1  ;;  %v291_v10 = vadd.f32 %v290_v6, %v191_v8  ;;  %v1414_v6 = vld [vmem:[%s1838_s6] ss:$0 sm:$0xff] }
  0xc6   :  { %v305_v11 = vadd.f32 %v304_v7, %v192_v9 }
  0xc7   :  { %v309_v16 = vmax.f32 %v291_v10, 0.0 }
  0xc8   :  { %v310_v18 = vmax.f32 %v305_v11, 0.0 }
  0xcc   :  { %v292_v12 = vpop.f32.mrf.mxu0 }
  0xcd   :  { %v293_v13 = vadd.f32 %v292_v12, %v191_v8  ;;  %v306_v14 = vpop.f32.mrf.mxu1  ;;  %v1211_v12 = vld [vmem:[#allocation13 + $0x30] sm:$0xf] }
  0xce   :  { %v307_v15 = vadd.f32 %v306_v14, %v192_v9  ;;  %v1368_v14 = vld [vmem:[#allocation13 + $0x34] sm:$0xf] }
  0xcf   :  { %v311_v17 = vmax.f32 %v293_v13, 0.0  ;;  %v1369_v13 = vld [vmem:[#allocation13 + $0x34] sm:$0xf0] }
  0xd0   :  { %v312_v19 = vmax.f32 %v307_v15, 0.0  ;;  %v1212_v15 = vor.u32 %v1369_v13, %v1211_v12 }
  0xd1   :  { %v313_v20 = vpack.c.bf16 %v311_v17, %v309_v16  ;;  %v1213_v16 = vld [vmem:[#allocation13 + $0x38] sm:$0xf0] }
  0xd2   :  { %v314_v21 = vpack.c.bf16 %v312_v19, %v310_v18  ;;  %v1216_v17 = vor.u32 %v1368_v14, %v1213_v16  ;;  %754 = vmatpush.bf16.msrb.mxu2 %v1212_v15  ;;  %v1203_v18 = vld [vmem:[#allocation13 + $0x20] sm:$0xf]  ;;  %v1367_v19 = vld [vmem:[#allocation13 + $0x24] sm:$0xf0]  ;;  %v1416_v15 = vld [vmem:[%s1844_s12] ss:$0 sm:$0xff] }
  0xd3   :  { %455 = vmatmul.bf16.vlgmr.msra.gmra.mxu2 %v313_v20  ;;  %v1366_v20 = vld [vmem:[#allocation13 + $0x24] sm:$0xf] }
  0xd4   :  { %469 = vmatmul.bf16.vlgmr.msra.gmra.mxu3 %v314_v21  ;;  %v1204_v21 = vor.u32 %v1367_v19, %v1203_v18  ;;  %v1208_v23 = vor.u32 %v1366_v20, %v1205_v22 }
  0xd5   :  { %768 = vmatpush.bf16.msrb.mxu3 %v1216_v17 }
  0xd6   :  { %755 = vmatpush.bf16.msrb.mxu2 %v1204_v21 }
  0xd9   :  { %769 = vmatpush.bf16.msrb.mxu3 %v1208_v23 }
  0xda   :  { %756 = vmatpush.bf16.msrb.mxu2 %v1196_v27 }
  0xdd   :  { %770 = vmatpush.bf16.msrb.mxu3 %v1200_v29 }
 0x156   :  { %v456_v31 = vpop.f32.mrf.mxu2 }
 0x157   :  { %v470_v33 = vpop.f32.mrf.mxu3  ;;  %v457_v34 = vadd.f32 %v1413_v32, %v456_v31  ;;  %v1363_v31 = vld [vmem:[#allocation13 + $0x4] sm:$0xf0] }
 0x159   :  { %v471_v36 = vadd.f32 %v470_v33, %v457_v34  ;;  %v1188_v33 = vor.u32 %v1363_v31, %v1187_v30  ;;  %v1189_v34 = vld [vmem:[#allocation13 + $0x8] sm:$0xf0] }
 0x15b   :  { %v475_v40 = vmax.f32 %v471_v36, 0.0  ;;  %757 = vmatpush.bf16.msrb.mxu2 %v1188_v33  ;;  %v1385_v36 = vld [vmem:[#allocation14 + $0x38] sm:$0xff] }
 0x15c   :  { %916 = vmatpush.bf16.msra.mxu0 %v1385_v36 }
 0x15e   :  { %v458_v35 = vpop.f32.mrf.mxu2 }
 0x15f   :  { %v459_v37 = vadd.f32 %v1413_v32, %v458_v35  ;;  %v472_v38 = vpop.f32.mrf.mxu3  ;;  %v1362_v32 = vld [vmem:[#allocation13 + $0x4] sm:$0xf] }
 0x160   :  { %v1192_v35 = vor.u32 %v1362_v32, %v1189_v34 }
 0x161   :  { %v473_v39 = vadd.f32 %v472_v38, %v459_v37  ;;  %v1393_v37 = vld [vmem:[#allocation14 + $0x78] sm:$0xff]  ;;  %v1384_v38 = vld [vmem:[#allocation14 + $0x30] sm:$0xff] }
 0x162   :  { %771 = vmatpush.bf16.msrb.mxu3 %v1192_v35  ;;  %930 = vmatpush.bf16.msra.mxu1 %v1393_v37 }
 0x163   :  { %v476_v41 = vmax.f32 %v473_v39, 0.0  ;;  %v1392_v39 = vld [vmem:[#allocation14 + $0x70] sm:$0xff]  ;;  %917 = vmatpush.bf16.msra.mxu0 %v1384_v38 }
 0x165   :  { %v477_v42 = vpack.c.bf16 %v476_v41, %v475_v40  ;;  %v1383_v40 = vld [vmem:[#allocation14 + $0x28] sm:$0xff] }
 0x166   :  { %931 = vmatpush.bf16.msra.mxu1 %v1392_v39  ;;  %v1391_v41 = vld [vmem:[#allocation14 + $0x68] sm:$0xff] }
 0x167   :  { %554 = vmatmul.bf16.vlgmr.msrb.gmra.mxu0 %v477_v42  ;;  %v1382_v42 = vld [vmem:[#allocation14 + $0x20] sm:$0xff] }
 0x168   :  { %918 = vmatpush.bf16.msra.mxu0 %v1383_v40 }
 0x16a   :  { %932 = vmatpush.bf16.msra.mxu1 %v1391_v41 }
 0x16c   :  { %919 = vmatpush.bf16.msra.mxu0 %v1382_v42 }
 0x16e   :  { %933 = vmatpush.bf16.msra.mxu1 %v1390_v43 }
 0x170   :  { %920 = vmatpush.bf16.msra.mxu0 %v1381_v52 }
 0x172   :  { %934 = vmatpush.bf16.msra.mxu1 %v1389_v53 }
 0x174   :  { %921 = vmatpush.bf16.msra.mxu0 %v1380_v54 }
 0x176   :  { %935 = vmatpush.bf16.msra.mxu1 %v1388_v55 }
 0x178   :  { %922 = vmatpush.bf16.msra.mxu0 %v1379_v56 }
 0x17a   :  { %936 = vmatpush.bf16.msra.mxu1 %v1387_v57 }
 0x17c   :  { %923 = vmatpush.bf16.msra.mxu0 %v1378_v58 }
 0x17e   :  { %937 = vmatpush.bf16.msra.mxu1 %v1386_v59 }
 0x1e4   :  { %v555_v7 = vpop.f32.mrf.mxu0 }
 0x1e5   :  { %v556_v8 = vadd.f32 %v1414_v6, %v555_v7 }
 0x1e7   :  { %560 = vst [vmem:[#allocation16] sm:$0xff] %v556_v8 }
 0x1ec   :  { %v557_v9 = vpop.f32.mrf.mxu0 }
 0x1ed   :  { %v558_v10 = vadd.f32 %v1414_v6, %v557_v9 }
 0x1ef   :  { %561 = vst [vmem:[#allocation16 + $0x8] sm:$0xff] %v558_v10  ;;  %v562_v11 = vpack.c.bf16 %v558_v10, %v556_v8 }
 0x1f0   :  { %960 = dma.vmem_to_hbm [thread:$0]  %s953_s10, 256, %s955_s26, [#allocation4], %s1672_s18, %s1672_s18, %s1673_s19  }
 0x1f1   :  { %639 = vmatmul.bf16.vlgmr.msrb.gmra.mxu1 %v562_v11 }
 0x26e   :  { %v640_v44 = vpop.f32.mrf.mxu1 }
 0x26f   :  { %v641_v46 = vadd.f32 %v1415_v45, %v640_v44 }
 0x271   :  { %v645_v49 = vmax.f32 %v641_v46, 0.0 }
 0x276   :  { %v642_v47 = vpop.f32.mrf.mxu1 }
 0x277   :  { %v643_v48 = vadd.f32 %v1415_v45, %v642_v47 }
 0x279   :  { %v646_v50 = vmax.f32 %v643_v48, 0.0 }
 0x27b   :  { %v647_v51 = vpack.c.bf16 %v646_v50, %v645_v49 }
 0x27d   :  { %758 = vmatmul.bf16.vlgmr.msrb.gmra.mxu2 %v647_v51  ;;  %772 = vmatmul.bf16.vlgmr.msrb.gmra.mxu3 %v647_v51 }
 0x300   :  { %v759_v61 = vpop.f32.mrf.mxu2  ;;  %v773_v62 = vpop.f32.mrf.mxu3 }
 0x301   :  { %v760_v1 = vadd.f32 %v759_v61, %v666_v63  ;;  %v774_v2 = vadd.f32 %v773_v62, %v667_v0 }
 0x303   :  { %v778_v7 = vmax.f32 %v760_v1, 0.0  ;;  %v779_v8 = vmax.f32 %v774_v2, 0.0 }
 0x308   :  { %v761_v3 = vpop.f32.mrf.mxu2  ;;  %v775_v4 = vpop.f32.mrf.mxu3 }
 0x309   :  { %v762_v5 = vadd.f32 %v761_v3, %v666_v63  ;;  %v776_v6 = vadd.f32 %v775_v4, %v667_v0 }
 0x30b   :  { %v780_v9 = vmax.f32 %v762_v5, 0.0  ;;  %v781_v10 = vmax.f32 %v776_v6, 0.0 }
 0x30d   :  { %v782_v11 = vpack.c.bf16 %v780_v9, %v778_v7  ;;  %v783_v12 = vpack.c.bf16 %v781_v10, %v779_v8 }
 0x30f   :  { %924 = vmatmul.bf16.vlgmr.msra.gmra.mxu0 %v782_v11  ;;  %938 = vmatmul.bf16.vlgmr.msra.gmra.mxu1 %v783_v12 }
 0x38c   :  { %v925_v13 = vpop.f32.mrf.mxu0  ;;  %v939_v14 = vpop.f32.mrf.mxu1 }
 0x38d   :  { %v926_v16 = vadd.f32 %v1416_v15, %v925_v13 }
 0x38f   :  { %v940_v20 = vadd.f32 %v939_v14, %v926_v16 }
 0x394   :  { %v927_v17 = vpop.f32.mrf.mxu0  ;;  %v941_v19 = vpop.f32.mrf.mxu1 }
 0x395   :  { %v928_v18 = vadd.f32 %v1416_v15, %v927_v17 }
 0x397   :  { %v942_v21 = vadd.f32 %v941_v19, %v928_v18 }
 0x399   :  { %v1397_v22 = vpack.c.bf16 %v942_v21, %v940_v20 }
 0x39b   :  { %1398 = vst [vmem:[#allocation17] sm:$0xff] %v1397_v22  }
 0x39c   :  { %973 = dma.vmem_to_hbm [thread:$0]  %s966_s2, 128, %s968_s16, [#allocation18], %s1675_s27, %s1675_s27, %s1676_s28  }
 0x39d   :  { %1667 = dma.done.wait [#allocation4], 256  }
 0x39e   :  { %1668 = vsyncadd [#allocation4], 4294967040 }
 0x39f   :  { %1669 = dma.done.wait [#allocation18], 128  }
 0x3a0   :  { %1670 = vsyncadd [#allocation18], 4294967168 }
 0x3a1   :  { %982 = vsyncpa [#allocation3], 1 }
 0x3a2   :  { %983 = vsyncpa [#allocation6], 1 }
 0x3a3   :  { %984 = vsyncpa [#allocation9], 1 }
 0x3a4   :  { %985 = vsyncpa [#allocation12], 1 }
 0x3a5   :  { %986 = vsyncpa [#allocation15], 1 }
 0x3a6   :  { %987 = vsyncpa [#allocation4], 1 }
 0x3a7   :  { %988 = vsyncpa [#allocation18], 1 }

</bundles_post_ra>
